<compile_context>
chip_gen: v5e
topology: v5e:2x2
jax: 0.10.0
libtpu: 0.0.40
codegen_flags: <defaults>
</compile_context>

<pallas_src>
import functools

import jax
import jax.numpy as jnp
from jax import lax
from jax.experimental import pallas as pl
from jax.experimental.pallas import tpu as pltpu

BN_EPS = 1e-5


def _round_up(a, b):
    return (a + b - 1) // b * b


def _vmem_limit_bytes():
    """Scoped-VMEM budget: ~48 MiB on v7x (64 MiB physical), ~96 MiB on
    v5e/v6e (128 MiB physical).  Falls back to a safe default if the
    hardware query is unavailable."""
    try:
        cap = pltpu.get_tpu_info().vmem_capacity_bytes
        return int(min(96 << 20, max(32 << 20, cap - (16 << 20))))
    except Exception:
        return 32 << 20


def _pick_oc_tiling(oc):
    """Return (oc_padded, oc_tile).

    oc <= 128: a single full-extent block (legal because the block equals the
    full array dim) -- no padding, nothing to slice off at the end.
    Larger oc: 256-wide tiles fill the 256x256 MXU on v6e/v7x; 128 otherwise
    (v5e's MXU is 4x128x128, so 256 buys nothing there).
    """
    if oc <= 128:
        return oc, oc
    tn = 256 if oc % 256 == 0 else 128
    return _round_up(oc, tn), tn


# ---------------------------------------------------------------------------
# Phase 1: conv (shifted-matmul accumulation, no im2col) + bias + per-tile
# partial batch statistics.  grid = (batch, oc_tiles); both axes "parallel".
# ---------------------------------------------------------------------------
def _conv_stats_kernel(x_ref, w_ref, b_ref, y_ref, sum_ref, sq_ref,
                       *, kh, kw, stride, oh, ow, cin):
    xblk = x_ref[0]                                   # (Hp, Wp, Cin)   bf16
    wmat = w_ref[...]                                 # (KH*KW*Cin, tn) bf16
    tn = wmat.shape[-1]

    # Conv as KH*KW shifted matmuls accumulated in f32 (bf16 MXU inputs).
    acc = jnp.zeros((oh * ow, tn), jnp.float32)
    for i in range(kh):
        for j in range(kw):
            slab = xblk[i:i + (oh - 1) * stride + 1:stride,
                        j:j + (ow - 1) * stride + 1:stride, :]   # (OH, OW, Cin)
            lhs = slab.reshape(oh * ow, cin)
            rhs = wmat[(i * kw + j) * cin:(i * kw + j + 1) * cin, :]
            acc = acc + jnp.dot(lhs, rhs, preferred_element_type=jnp.float32)
    y = acc + b_ref[...]                              # (OH*OW, tn) f32

    # Per-channel batch statistics on the f32 tile (before the bf16 cast).
    # Each grid point writes its own partial row -> no cross-step accumulator,
    # no pl.when init, fully parallel grid.
    sum_ref[0] = jnp.sum(y, axis=0, keepdims=True)
    sq_ref[0] = jnp.sum(y * y, axis=0, keepdims=True)

    # Store y channel-major and in bf16: phase 2 becomes purely element-wise
    # and the final NCHW output needs no trailing XLA transpose pass.
    y_ref[0] = y.T.astype(y_ref.dtype)


# ---------------------------------------------------------------------------
# Phase 2: fused affine BN + ReLU epilogue (one FMA + max per element).
# ---------------------------------------------------------------------------
def _bn_relu_kernel(y_ref, scale_ref, shift_ref, o_ref):
    y = y_ref[0].astype(jnp.float32)                  # (tn, OH*OW)
    o_ref[0] = jnp.maximum(y * scale_ref[...] + shift_ref[...], 0.0)


def conv_bn_relu(x, weight, bias, gamma, beta, *, stride=1, padding=0):
    """relu(batchnorm(conv2d(x, weight, bias))) with training-mode (batch)
    statistics.

    x: (N, Cin, H, W) f32, weight: (OC, Cin, KH, KW), bias/gamma/beta: (OC,).
    Returns (N, OC, OH, OW) f32, matching the PyTorch module's forward.
    """
    n, cin, h, w = x.shape
    oc, _, kh, kw = weight.shape
    oh = (h + 2 * padding - kh) // stride + 1
    ow = (w + 2 * padding - kw) // stride + 1
    hp, wp = h + 2 * padding, w + 2 * padding
    ohw = oh * ow
    kdim = kh * kw * cin

    oc_pad, tn = _pick_oc_tiling(oc)
    n_oc = oc_pad // tn
    vmem = _vmem_limit_bytes()

    # ---- wrapper-side prep (one small pass over x / weight, fused by XLA) --
    # NHWC + spatial zero pad + bf16 cast: the kernel DMAs the raw activation
    # directly -- no 9x im2col expansion ever hits HBM.
    xp = jnp.pad(x, ((0, 0), (0, 0), (padding, padding), (padding, padding)))
    xp = xp.transpose(0, 2, 3, 1).astype(jnp.bfloat16)        # (N, Hp, Wp, Cin)
    # Flattened-K ordering (i, j, c) matches the in-kernel shifted-matmul loop.
    wmat = weight.transpose(2, 3, 1, 0).reshape(kdim, oc)
    wmat = jnp.pad(wmat, ((0, 0), (0, oc_pad - oc))).astype(jnp.bfloat16)
    bias_p = jnp.pad(bias, (0, oc_pad - oc)).reshape(1, oc_pad).astype(jnp.float32)
    gamma_p = jnp.pad(gamma, (0, oc_pad - oc)).astype(jnp.float32)
    beta_p = jnp.pad(beta, (0, oc_pad - oc)).astype(jnp.float32)

    # ----------------- phase 1: conv + bias + partial batch stats -----------
    y_cm, psum, psq = pl.pallas_call(
        functools.partial(_conv_stats_kernel, kh=kh, kw=kw, stride=stride,
                          oh=oh, ow=ow, cin=cin),
        out_shape=(
            jax.ShapeDtypeStruct((n, oc_pad, ohw), jnp.bfloat16),   # y (bf16)
            jax.ShapeDtypeStruct((n, 1, oc_pad), jnp.float32),      # sum
            jax.ShapeDtypeStruct((n, 1, oc_pad), jnp.float32),      # sum of sq
        ),
        grid=(n, n_oc),
        in_specs=[
            pl.BlockSpec((1, hp, wp, cin), lambda b, j: (b, 0, 0, 0)),
            pl.BlockSpec((kdim, tn), lambda b, j: (0, j)),
            pl.BlockSpec((1, tn), lambda b, j: (0, j)),
        ],
        out_specs=(
            pl.BlockSpec((1, tn, ohw), lambda b, j: (b, j, 0)),
            pl.BlockSpec((1, 1, tn), lambda b, j: (b, 0, j)),
            pl.BlockSpec((1, 1, tn), lambda b, j: (b, 0, j)),
        ),
        compiler_params=pltpu.CompilerParams(
            dimension_semantics=("parallel", "parallel"),
            vmem_limit_bytes=vmem,
        ),
    )(xp, wmat, bias_p)

    # -------- tiny per-channel stats math: fold BN into scale / shift -------
    m = jnp.float32(n * ohw)
    tot = jnp.sum(psum, axis=(0, 1))                  # (oc_pad,)
    totsq = jnp.sum(psq, axis=(0, 1))
    mean = tot / m
    # TODO(synk): E[y^2]-E[y]^2 can lose precision when |mean| >> std at very
    # large M; a two-pass (mean-centred) variance would be more robust.
    var = jnp.maximum(totsq / m - mean * mean, 0.0)   # biased var (BN training)
    inv_std = lax.rsqrt(var + BN_EPS)
    scale_v = gamma_p * inv_std
    shift_v = beta_p - mean * scale_v
    scale = scale_v.reshape(oc_pad, 1)
    shift = shift_v.reshape(oc_pad, 1)

    # ----------------- phase 2: y*scale + shift, ReLU (element-wise) --------
    # y is already channel-major, so the result is NCHW after a free reshape.
    out_cm = pl.pallas_call(
        _bn_relu_kernel,
        out_shape=jax.ShapeDtypeStruct((n, oc_pad, ohw), jnp.float32),
        grid=(n, n_oc),
        in_specs=[
            pl.BlockSpec((1, tn, ohw), lambda b, j: (b, j, 0)),
            pl.BlockSpec((tn, 1), lambda b, j: (j, 0)),
            pl.BlockSpec((tn, 1), lambda b, j: (j, 0)),
        ],
        out_specs=pl.BlockSpec((1, tn, ohw), lambda b, j: (b, j, 0)),
        compiler_params=pltpu.CompilerParams(
            dimension_semantics=("parallel", "parallel"),
            vmem_limit_bytes=vmem,
        ),
    )(y_cm, scale, shift)

    if oc_pad != oc:
        out_cm = out_cm[:, :oc, :]
    return out_cm.reshape(n, oc, oh, ow)


def _reference(x, weight, bias, gamma, beta, *, stride=1, padding=0):
    y = lax.conv_general_dilated(
        x, weight, window_strides=(stride, stride),
        padding=((padding, padding), (padding, padding)),
        dimension_numbers=("NCHW", "OIHW", "NCHW"))
    y = y + bias[None, :, None, None]
    mean = jnp.mean(y, axis=(0, 2, 3), keepdims=True)
    var = jnp.mean((y - mean) ** 2, axis=(0, 2, 3), keepdims=True)
    y = (y - mean) * lax.rsqrt(var + BN_EPS)
    y = y * gamma[None, :, None, None] + beta[None, :, None, None]
    return jnp.maximum(y, 0.0)


if __name__ == "__main__":
    key = jax.random.PRNGKey(0)
    N, C_IN, C_OUT, H, W = 2, 4, 8, 16, 16
    KH = KW = 3
    STRIDE, PAD = 1, 1

    kx, kw_, kb = jax.random.split(key, 3)
    x = jax.random.normal(kx, (N, C_IN, H, W), dtype=jnp.float32)
    # deterministic synthetic parameters (shapes match nn.Conv2d / nn.BatchNorm2d)
    fan_in = C_IN * KH * KW
    bound = 1.0 / (fan_in ** 0.5)
    weight = jax.random.uniform(kw_, (C_OUT, C_IN, KH, KW),
                                minval=-bound, maxval=bound, dtype=jnp.float32)
    bias = jax.random.uniform(kb, (C_OUT,), minval=-bound, maxval=bound,
                              dtype=jnp.float32)
    gamma = jnp.ones((C_OUT,), jnp.float32)   # BatchNorm2d weight init
    beta = jnp.zeros((C_OUT,), jnp.float32)   # BatchNorm2d bias init

    fwd = jax.jit(functools.partial(conv_bn_relu, stride=STRIDE, padding=PAD))
    out = jax.block_until_ready(fwd(x, weight, bias, gamma, beta))

    ref = _reference(x, weight, bias, gamma, beta, stride=STRIDE, padding=PAD)
    assert out.shape == (N, C_OUT, H, W), out.shape
    err = float(jnp.max(jnp.abs(out - ref)))
    # bf16 MXU inputs + bf16 y intermediate (per the perf review) loosen the
    # old 1e-4 f32 tolerance; typical max error here is ~1e-2.
    assert err < 5e-2, err

    # TODO(synk): BatchNorm2d running_mean/running_var buffer updates are a
    # training-time side effect and are not produced by this forward pass.
    print("KERNEL_OK")
</pallas_src>

<mosaic_0001>
module attributes {stable_mosaic.version = 11 : i64} {
  func.func @_conv_stats_kernel(%arg0: i32, %arg1: i32, %arg2: memref<1x18x18x4xbf16, #tpu.memory_space<vmem>>, %arg3: memref<36x8xbf16, #tpu.memory_space<vmem>>, %arg4: memref<1x8xf32, #tpu.memory_space<vmem>>, %arg5: memref<1x8x256xbf16, #tpu.memory_space<vmem>>, %arg6: memref<1x1x8xf32, #tpu.memory_space<vmem>>, %arg7: memref<1x1x8xf32, #tpu.memory_space<vmem>>) attributes {dimension_semantics = [#tpu.dimension_semantics<parallel>, #tpu.dimension_semantics<parallel>], iteration_bounds = array<i64: 2, 1>, scalar_prefetch = 0 : i64, scratch_operands = 0 : i64, tpu.core_type = #tpu.core_type<tc>, window_params = [{transform_indices = @transform_0, window_bounds = array<i64: 1, 18, 18, 4>}, {transform_indices = @transform_1, window_bounds = array<i64: 36, 8>}, {transform_indices = @transform_2, window_bounds = array<i64: 1, 8>}, {transform_indices = @transform_3, window_bounds = array<i64: 1, 8, 256>}, {transform_indices = @transform_4, window_bounds = array<i64: 1, 1, 8>}, {transform_indices = @transform_5, window_bounds = array<i64: 1, 1, 8>}]} {
    %c0 = arith.constant 0 : index
    %c0_0 = arith.constant 0 : index
    %c0_1 = arith.constant 0 : index
    %c0_2 = arith.constant 0 : index
    %0 = vector.load %arg2[%c0, %c0_0, %c0_1, %c0_2] : memref<1x18x18x4xbf16, #tpu.memory_space<vmem>>, vector<1x18x18x4xbf16>
    %1 = vector.shape_cast %0 : vector<1x18x18x4xbf16> to vector<18x18x4xbf16>
    %c0_3 = arith.constant 0 : index
    %c0_4 = arith.constant 0 : index
    %2 = vector.load %arg3[%c0_3, %c0_4] : memref<36x8xbf16, #tpu.memory_space<vmem>>, vector<36x8xbf16>
    %cst = arith.constant 0.000000e+00 : f32
    %3 = vector.broadcast %cst : f32 to vector<256x8xf32>
    %4 = vector.extract_strided_slice %1 {offsets = [0, 0, 0], sizes = [16, 16, 4], strides = [1, 1, 1]} : vector<18x18x4xbf16> to vector<16x16x4xbf16>
    %5 = vector.shape_cast %4 : vector<16x16x4xbf16> to vector<256x4xbf16>
    %6 = vector.extract_strided_slice %2 {offsets = [0, 0], sizes = [4, 8], strides = [1, 1]} : vector<36x8xbf16> to vector<4x8xbf16>
    %cst_5 = arith.constant dense<0.000000e+00> : vector<256x8xf32>
    %7 = tpu.matmul %5, %6, %cst_5 {dimension_numbers = #tpu.dot_dimension_numbers<[1], [0], [0], [1], [0, 0, 1, 1], [], []>} : vector<256x4xbf16>, vector<4x8xbf16>, vector<256x8xf32> -> vector<256x8xf32>
    %8 = arith.addf %3, %7 : vector<256x8xf32>
    %9 = vector.extract_strided_slice %1 {offsets = [0, 1, 0], sizes = [16, 16, 4], strides = [1, 1, 1]} : vector<18x18x4xbf16> to vector<16x16x4xbf16>
    %10 = vector.shape_cast %9 : vector<16x16x4xbf16> to vector<256x4xbf16>
    %11 = vector.extract_strided_slice %2 {offsets = [4, 0], sizes = [4, 8], strides = [1, 1]} : vector<36x8xbf16> to vector<4x8xbf16>
    %cst_6 = arith.constant dense<0.000000e+00> : vector<256x8xf32>
    %12 = tpu.matmul %10, %11, %cst_6 {dimension_numbers = #tpu.dot_dimension_numbers<[1], [0], [0], [1], [0, 0, 1, 1], [], []>} : vector<256x4xbf16>, vector<4x8xbf16>, vector<256x8xf32> -> vector<256x8xf32>
    %13 = arith.addf %8, %12 : vector<256x8xf32>
    %14 = vector.extract_strided_slice %1 {offsets = [0, 2, 0], sizes = [16, 16, 4], strides = [1, 1, 1]} : vector<18x18x4xbf16> to vector<16x16x4xbf16>
    %15 = vector.shape_cast %14 : vector<16x16x4xbf16> to vector<256x4xbf16>
    %16 = vector.extract_strided_slice %2 {offsets = [8, 0], sizes = [4, 8], strides = [1, 1]} : vector<36x8xbf16> to vector<4x8xbf16>
    %cst_7 = arith.constant dense<0.000000e+00> : vector<256x8xf32>
    %17 = tpu.matmul %15, %16, %cst_7 {dimension_numbers = #tpu.dot_dimension_numbers<[1], [0], [0], [1], [0, 0, 1, 1], [], []>} : vector<256x4xbf16>, vector<4x8xbf16>, vector<256x8xf32> -> vector<256x8xf32>
    %18 = arith.addf %13, %17 : vector<256x8xf32>
    %19 = vector.extract_strided_slice %1 {offsets = [1, 0, 0], sizes = [16, 16, 4], strides = [1, 1, 1]} : vector<18x18x4xbf16> to vector<16x16x4xbf16>
    %20 = vector.shape_cast %19 : vector<16x16x4xbf16> to vector<256x4xbf16>
    %21 = vector.extract_strided_slice %2 {offsets = [12, 0], sizes = [4, 8], strides = [1, 1]} : vector<36x8xbf16> to vector<4x8xbf16>
    %cst_8 = arith.constant dense<0.000000e+00> : vector<256x8xf32>
    %22 = tpu.matmul %20, %21, %cst_8 {dimension_numbers = #tpu.dot_dimension_numbers<[1], [0], [0], [1], [0, 0, 1, 1], [], []>} : vector<256x4xbf16>, vector<4x8xbf16>, vector<256x8xf32> -> vector<256x8xf32>
    %23 = arith.addf %18, %22 : vector<256x8xf32>
    %24 = vector.extract_strided_slice %1 {offsets = [1, 1, 0], sizes = [16, 16, 4], strides = [1, 1, 1]} : vector<18x18x4xbf16> to vector<16x16x4xbf16>
    %25 = vector.shape_cast %24 : vector<16x16x4xbf16> to vector<256x4xbf16>
    %26 = vector.extract_strided_slice %2 {offsets = [16, 0], sizes = [4, 8], strides = [1, 1]} : vector<36x8xbf16> to vector<4x8xbf16>
    %cst_9 = arith.constant dense<0.000000e+00> : vector<256x8xf32>
    %27 = tpu.matmul %25, %26, %cst_9 {dimension_numbers = #tpu.dot_dimension_numbers<[1], [0], [0], [1], [0, 0, 1, 1], [], []>} : vector<256x4xbf16>, vector<4x8xbf16>, vector<256x8xf32> -> vector<256x8xf32>
    %28 = arith.addf %23, %27 : vector<256x8xf32>
    %29 = vector.extract_strided_slice %1 {offsets = [1, 2, 0], sizes = [16, 16, 4], strides = [1, 1, 1]} : vector<18x18x4xbf16> to vector<16x16x4xbf16>
    %30 = vector.shape_cast %29 : vector<16x16x4xbf16> to vector<256x4xbf16>
    %31 = vector.extract_strided_slice %2 {offsets = [20, 0], sizes = [4, 8], strides = [1, 1]} : vector<36x8xbf16> to vector<4x8xbf16>
    %cst_10 = arith.constant dense<0.000000e+00> : vector<256x8xf32>
    %32 = tpu.matmul %30, %31, %cst_10 {dimension_numbers = #tpu.dot_dimension_numbers<[1], [0], [0], [1], [0, 0, 1, 1], [], []>} : vector<256x4xbf16>, vector<4x8xbf16>, vector<256x8xf32> -> vector<256x8xf32>
    %33 = arith.addf %28, %32 : vector<256x8xf32>
    %34 = vector.extract_strided_slice %1 {offsets = [2, 0, 0], sizes = [16, 16, 4], strides = [1, 1, 1]} : vector<18x18x4xbf16> to vector<16x16x4xbf16>
    %35 = vector.shape_cast %34 : vector<16x16x4xbf16> to vector<256x4xbf16>
    %36 = vector.extract_strided_slice %2 {offsets = [24, 0], sizes = [4, 8], strides = [1, 1]} : vector<36x8xbf16> to vector<4x8xbf16>
    %cst_11 = arith.constant dense<0.000000e+00> : vector<256x8xf32>
    %37 = tpu.matmul %35, %36, %cst_11 {dimension_numbers = #tpu.dot_dimension_numbers<[1], [0], [0], [1], [0, 0, 1, 1], [], []>} : vector<256x4xbf16>, vector<4x8xbf16>, vector<256x8xf32> -> vector<256x8xf32>
    %38 = arith.addf %33, %37 : vector<256x8xf32>
    %39 = vector.extract_strided_slice %1 {offsets = [2, 1, 0], sizes = [16, 16, 4], strides = [1, 1, 1]} : vector<18x18x4xbf16> to vector<16x16x4xbf16>
    %40 = vector.shape_cast %39 : vector<16x16x4xbf16> to vector<256x4xbf16>
    %41 = vector.extract_strided_slice %2 {offsets = [28, 0], sizes = [4, 8], strides = [1, 1]} : vector<36x8xbf16> to vector<4x8xbf16>
    %cst_12 = arith.constant dense<0.000000e+00> : vector<256x8xf32>
    %42 = tpu.matmul %40, %41, %cst_12 {dimension_numbers = #tpu.dot_dimension_numbers<[1], [0], [0], [1], [0, 0, 1, 1], [], []>} : vector<256x4xbf16>, vector<4x8xbf16>, vector<256x8xf32> -> vector<256x8xf32>
    %43 = arith.addf %38, %42 : vector<256x8xf32>
    %44 = vector.extract_strided_slice %1 {offsets = [2, 2, 0], sizes = [16, 16, 4], strides = [1, 1, 1]} : vector<18x18x4xbf16> to vector<16x16x4xbf16>
    %45 = vector.shape_cast %44 : vector<16x16x4xbf16> to vector<256x4xbf16>
    %46 = vector.extract_strided_slice %2 {offsets = [32, 0], sizes = [4, 8], strides = [1, 1]} : vector<36x8xbf16> to vector<4x8xbf16>
    %cst_13 = arith.constant dense<0.000000e+00> : vector<256x8xf32>
    %47 = tpu.matmul %45, %46, %cst_13 {dimension_numbers = #tpu.dot_dimension_numbers<[1], [0], [0], [1], [0, 0, 1, 1], [], []>} : vector<256x4xbf16>, vector<4x8xbf16>, vector<256x8xf32> -> vector<256x8xf32>
    %48 = arith.addf %43, %47 : vector<256x8xf32>
    %c0_14 = arith.constant 0 : index
    %c0_15 = arith.constant 0 : index
    %49 = vector.load %arg4[%c0_14, %c0_15] : memref<1x8xf32, #tpu.memory_space<vmem>>, vector<1x8xf32>
    %50 = vector.broadcast %49 : vector<1x8xf32> to vector<256x8xf32>
    %51 = arith.addf %48, %50 : vector<256x8xf32>
    %cst_16 = arith.constant dense<0.000000e+00> : vector<8xf32>
    %52 = vector.multi_reduction <add>, %51, %cst_16 [0] : vector<256x8xf32> to vector<8xf32>
    %53 = vector.shape_cast %52 : vector<8xf32> to vector<1x8xf32>
    %c0_17 = arith.constant 0 : index
    %c0_18 = arith.constant 0 : index
    %c0_19 = arith.constant 0 : index
    %54 = vector.load %arg6[%c0_17, %c0_18, %c0_19] : memref<1x1x8xf32, #tpu.memory_space<vmem>>, vector<1x1x8xf32>
    %55 = vector.shape_cast %54 : vector<1x1x8xf32> to vector<1x8xf32>
    %56 = vector.shape_cast %53 : vector<1x8xf32> to vector<1x1x8xf32>
    tpu.vector_store %arg6[%c0_17, %c0_18, %c0_19], %56 {strides = array<i32>} : memref<1x1x8xf32, #tpu.memory_space<vmem>>, vector<1x1x8xf32>,
    %57 = arith.mulf %51, %51 : vector<256x8xf32>
    %cst_20 = arith.constant dense<0.000000e+00> : vector<8xf32>
    %58 = vector.multi_reduction <add>, %57, %cst_20 [0] : vector<256x8xf32> to vector<8xf32>
    %59 = vector.shape_cast %58 : vector<8xf32> to vector<1x8xf32>
    %c0_21 = arith.constant 0 : index
    %c0_22 = arith.constant 0 : index
    %c0_23 = arith.constant 0 : index
    %60 = vector.load %arg7[%c0_21, %c0_22, %c0_23] : memref<1x1x8xf32, #tpu.memory_space<vmem>>, vector<1x1x8xf32>
    %61 = vector.shape_cast %60 : vector<1x1x8xf32> to vector<1x8xf32>
    %62 = vector.shape_cast %59 : vector<1x8xf32> to vector<1x1x8xf32>
    tpu.vector_store %arg7[%c0_21, %c0_22, %c0_23], %62 {strides = array<i32>} : memref<1x1x8xf32, #tpu.memory_space<vmem>>, vector<1x1x8xf32>,
    %63 = tpu.transpose %51, [1, 0] : vector<256x8xf32> -> vector<8x256xf32>
    %64 = arith.truncf %63 : vector<8x256xf32> to vector<8x256xbf16>
    %c0_24 = arith.constant 0 : index
    %c0_25 = arith.constant 0 : index
    %c0_26 = arith.constant 0 : index
    %65 = vector.load %arg5[%c0_24, %c0_25, %c0_26] : memref<1x8x256xbf16, #tpu.memory_space<vmem>>, vector<1x8x256xbf16>
    %66 = vector.shape_cast %65 : vector<1x8x256xbf16> to vector<8x256xbf16>
    %67 = vector.shape_cast %64 : vector<8x256xbf16> to vector<1x8x256xbf16>
    tpu.vector_store %arg5[%c0_24, %c0_25, %c0_26], %67 {strides = array<i32>} : memref<1x8x256xbf16, #tpu.memory_space<vmem>>, vector<1x8x256xbf16>,
    return
  }
  func.func @transform_0(%arg0: i32, %arg1: i32) -> (i32, i32, i32, i32) {
    %c0_i32 = arith.constant 0 : i32
    %c0_i32_0 = arith.constant 0 : i32
    %c0_i32_1 = arith.constant 0 : i32
    %c0_i32_2 = arith.constant 0 : i32
    return %arg0, %c0_i32, %c0_i32_0, %c0_i32_1 : i32, i32, i32, i32
  }
  func.func @transform_1(%arg0: i32, %arg1: i32) -> (i32, i32) {
    %c0_i32 = arith.constant 0 : i32
    %c0_i32_0 = arith.constant 0 : i32
    return %c0_i32, %arg1 : i32, i32
  }
  func.func @transform_2(%arg0: i32, %arg1: i32) -> (i32, i32) {
    %c0_i32 = arith.constant 0 : i32
    %c0_i32_0 = arith.constant 0 : i32
    return %c0_i32, %arg1 : i32, i32
  }
  func.func @transform_3(%arg0: i32, %arg1: i32) -> (i32, i32, i32) {
    %c0_i32 = arith.constant 0 : i32
    %c0_i32_0 = arith.constant 0 : i32
    return %arg0, %arg1, %c0_i32 : i32, i32, i32
  }
  func.func @transform_4(%arg0: i32, %arg1: i32) -> (i32, i32, i32) {
    %c0_i32 = arith.constant 0 : i32
    %c0_i32_0 = arith.constant 0 : i32
    return %arg0, %c0_i32, %arg1 : i32, i32, i32
  }
  func.func @transform_5(%arg0: i32, %arg1: i32) -> (i32, i32, i32) {
    %c0_i32 = arith.constant 0 : i32
    %c0_i32_0 = arith.constant 0 : i32
    return %arg0, %c0_i32, %arg1 : i32, i32, i32
  }
}

module attributes {stable_mosaic.version = 11 : i64} {
  func.func @_bn_relu_kernel(%arg0: i32, %arg1: i32, %arg2: memref<1x8x256xbf16, #tpu.memory_space<vmem>>, %arg3: memref<8x1xf32, #tpu.memory_space<vmem>>, %arg4: memref<8x1xf32, #tpu.memory_space<vmem>>, %arg5: memref<1x8x256xf32, #tpu.memory_space<vmem>>) attributes {dimension_semantics = [#tpu.dimension_semantics<parallel>, #tpu.dimension_semantics<parallel>], iteration_bounds = array<i64: 2, 1>, scalar_prefetch = 0 : i64, scratch_operands = 0 : i64, tpu.core_type = #tpu.core_type<tc>, window_params = [{transform_indices = @transform_0, window_bounds = array<i64: 1, 8, 256>}, {transform_indices = @transform_1, window_bounds = array<i64: 8, 1>}, {transform_indices = @transform_2, window_bounds = array<i64: 8, 1>}, {transform_indices = @transform_3, window_bounds = array<i64: 1, 8, 256>}]} {
    %c0 = arith.constant 0 : index
    %c0_0 = arith.constant 0 : index
    %c0_1 = arith.constant 0 : index
    %0 = vector.load %arg2[%c0, %c0_0, %c0_1] : memref<1x8x256xbf16, #tpu.memory_space<vmem>>, vector<1x8x256xbf16>
    %1 = vector.shape_cast %0 : vector<1x8x256xbf16> to vector<8x256xbf16>
    %2 = arith.extf %1 : vector<8x256xbf16> to vector<8x256xf32>
    %c0_2 = arith.constant 0 : index
    %c0_3 = arith.constant 0 : index
    %3 = vector.load %arg3[%c0_2, %c0_3] : memref<8x1xf32, #tpu.memory_space<vmem>>, vector<8x1xf32>
    %4 = vector.broadcast %3 : vector<8x1xf32> to vector<8x256xf32>
    %5 = arith.mulf %2, %4 : vector<8x256xf32>
    %c0_4 = arith.constant 0 : index
    %c0_5 = arith.constant 0 : index
    %6 = vector.load %arg4[%c0_4, %c0_5] : memref<8x1xf32, #tpu.memory_space<vmem>>, vector<8x1xf32>
    %7 = vector.broadcast %6 : vector<8x1xf32> to vector<8x256xf32>
    %8 = arith.addf %5, %7 : vector<8x256xf32>
    %cst = arith.constant 0.000000e+00 : f32
    %9 = vector.broadcast %cst : f32 to vector<8x256xf32>
    %10 = arith.maximumf %8, %9 : vector<8x256xf32>
    %c0_6 = arith.constant 0 : index
    %c0_7 = arith.constant 0 : index
    %c0_8 = arith.constant 0 : index
    %11 = vector.load %arg5[%c0_6, %c0_7, %c0_8] : memref<1x8x256xf32, #tpu.memory_space<vmem>>, vector<1x8x256xf32>
    %12 = vector.shape_cast %11 : vector<1x8x256xf32> to vector<8x256xf32>
    %13 = vector.shape_cast %10 : vector<8x256xf32> to vector<1x8x256xf32>
    tpu.vector_store %arg5[%c0_6, %c0_7, %c0_8], %13 {strides = array<i32>} : memref<1x8x256xf32, #tpu.memory_space<vmem>>, vector<1x8x256xf32>,
    return
  }
  func.func @transform_0(%arg0: i32, %arg1: i32) -> (i32, i32, i32) {
    %c0_i32 = arith.constant 0 : i32
    %c0_i32_0 = arith.constant 0 : i32
    return %arg0, %arg1, %c0_i32 : i32, i32, i32
  }
  func.func @transform_1(%arg0: i32, %arg1: i32) -> (i32, i32) {
    %c0_i32 = arith.constant 0 : i32
    %c0_i32_0 = arith.constant 0 : i32
    return %arg1, %c0_i32 : i32, i32
  }
  func.func @transform_2(%arg0: i32, %arg1: i32) -> (i32, i32) {
    %c0_i32 = arith.constant 0 : i32
    %c0_i32_0 = arith.constant 0 : i32
    return %arg1, %c0_i32 : i32, i32
  }
  func.func @transform_3(%arg0: i32, %arg1: i32) -> (i32, i32, i32) {
    %c0_i32 = arith.constant 0 : i32
    %c0_i32_0 = arith.constant 0 : i32
    return %arg0, %arg1, %c0_i32 : i32, i32, i32
  }
}

</mosaic_0001>

<bundles_post_ra>
// kernel: conv_bn_relu.3
= control target key start
LH: loop header
LB: loop body
LE: loop exit
PB: predicated region body
PF: predicated region fallthrough
CT: control target
= control target key end

     0   :  { %s473_s12 = smov 0   ;;  %s475_s13 = smov 0   ;;  %s512_s0 = inlined_call_operand.vmem [shape: bf16[2,8,256], index: 0, kind: input, shape index: {}]   ;;  %s513_s1 = inlined_call_operand.vmem [shape: f32[8,1], index: 1, kind: input, shape index: {}]   ;;  %s514_s2 = inlined_call_operand.vmem [shape: f32[8,1], index: 2, kind: input, shape index: {}]   ;;  %s515_s3 = inlined_call_operand.vmem [shape: f32[2,8,256], index: 3, kind: output, shape index: {}]  }
   0x1   :  { %s477_s14 = smov 0  }
   0x2 LB: > { %s25_s15 = sadd.s32 1, %s446_s13  ;;  %p393_p0 = scmp.ge.s32.totalorder %s450_s14, 1  ;;  %s450_s14 = sphi %s477_s14, %s13_s14   ;;  %s446_s13 = sphi %s475_s13, %s517_s13   ;;  %s442_s12 = sphi %s473_s12, %s516_s12  }
   0x3   : > { %p27_p1 = scmp.ge.s32.totalorder %s25_s15, 2  ;;  %p175_p2 = scmp.lt.s32.totalorder %s450_s14, 3 }
   0x5   : > { %s519_s15 = smov (%p27_p1, %s25_s15), 0  ;;  %p176_p3 = pnand %p393_p0, %p175_p2 }
   0x6   : > { %p215_p4 = scmp.lt.s32.totalorder (!%p176_p3), %s442_s12, 1 }
   0x7   : > { %179 = sbr.rel (%p176_p3) target bundleno = 143 (0x8f), region = 32 }
   0xc   : > { %v244_v0 = vld [vmem:[%s513_s1] sm:$0xff]  ;;  %v452_v1 = vmov 0   ;;  %s521_s12 = smov (!%p215_p4, %s442_s12), 1 }
   0xd   : > { %427 = vset.pattern.permute.xlu0 %v452_v1  ;;  %v252_v2 = vld [vmem:[%s514_s2] sm:$0xff]  ;;  %s400_s20 = sshll.u32 %s521_s12, 3  ;;  %s401_s24 = sshll.u32 %s521_s12, 4 }
   0xe   : > { %247 = vperm.xlu0 %427, %v244_v0   ;;  %s223_s23 = scalar_lea.vmem %s512_s0, %s400_s20  ;;  %s240_s27 = scalar_lea.vmem %s515_s3, %s401_s24 }
   0xf   : > { %v241_v4 = vld [vmem:[%s223_s23] sm:$0xff] }
  0x10   : > { %v242_v5 = vunpack.c.l.bf16 %v241_v4  ;;  %v243_v6 = vunpack.c.h.bf16 %v241_v4 }
  0x16   : > { %255 = vperm.xlu0 %427, %v252_v2  }
  0x80   : > { %v248_v3 = vpop.permute.xlu0 %247 }
  0x81   : > { %v250_v7 = vmul.f32 %v248_v3, %v242_v5  ;;  %v251_v8 = vmul.f32 %v248_v3, %v243_v6 }
  0x88   : > { %v256_v9 = vpop.permute.xlu0 %255 }
  0x89   : > { %v258_v10 = vadd.f32 %v256_v9, %v250_v7  ;;  %v259_v11 = vadd.f32 %v256_v9, %v251_v8 }
  0x8b   : > { %v260_v12 = vmax.f32 %v258_v10, 0.0  ;;  %v261_v13 = vmax.f32 %v259_v11, 0.0 }
  0x8d   : > { %262 = vst [vmem:[%s240_s27] sm:$0xff] %v260_v12 }
  0x8e   : > { %263 = vst [vmem:[%s240_s27 + $0x8] sm:$0xff] %v261_v13 }
  0x8f PF: > { %s13_s14 = sadd.s32 1, %s450_s14   ;;  %s516_s12 = smov %s446_s13 }
  0x90   : > { %p10_p5 = scmp.ge.s32.totalorder %s13_s14, 4   ;;  %s517_s13 = smov %s519_s15 }
  0x92   :  { %12 = sbr.rel (!%p10_p5) target bundleno = 2 (0x2), region = 68 }

// kernel: conv_bn_relu.2
= control target key start
LH: loop header
LB: loop body
LE: loop exit
PB: predicated region body
PF: predicated region fallthrough
CT: control target
= control target key end

     0   :  { %s3235_s18 = smov 0   ;;  %s3237_s19 = smov 0   ;;  %s4516_s0 = inlined_call_operand.vmem [shape: bf16[2,18,18,4], index: 0, kind: input, shape index: {}]   ;;  %s4517_s1 = inlined_call_operand.vmem [shape: bf16[36,8], index: 1, kind: input, shape index: {}]   ;;  %s4518_s2 = inlined_call_operand.vmem [shape: f32[1,8], index: 2, kind: input, shape index: {}]   ;;  %s4519_s3 = inlined_call_operand.vmem [shape: bf16[2,8,256], index: 3, kind: output, shape index: {0}]   ;;  %s4520_s4 = inlined_call_operand.vmem [shape: f32[2,1,8], index: 4, kind: output, shape index: {1}]   ;;  %s4521_s5 = inlined_call_operand.vmem [shape: f32[2,1,8], index: 5, kind: output, shape index: {2}]  }
   0x1   :  { %s3239_s20 = smov 0  }
   0x2 LB: > { %s28_s21 = sadd.s32 1, %s3199_s19  ;;  %p2846_p0 = scmp.ge.s32.totalorder %s3203_s20, 1  ;;  %s3203_s20 = sphi %s3239_s20, %s16_s20   ;;  %s3199_s19 = sphi %s3237_s19, %s4673_s19   ;;  %s3195_s18 = sphi %s3235_s18, %s4672_s18  }
   0x3   : > { %p30_p1 = scmp.ge.s32.totalorder %s28_s21, 2  ;;  %p227_p2 = scmp.lt.s32.totalorder %s3203_s20, 3 }
   0x5   : > { %s4675_s21 = smov (%p30_p1, %s28_s21), 0  ;;  %p228_p3 = pnand %p2846_p0, %p227_p2 }
   0x7   : > { %231 = sbr.rel (%p228_p3) target bundleno = 808 (0x328), region = 32 }
   0xc   : > { %v366_v0 = vld [vmem:[%s4517_s1] sm:$0xf]  ;;  %p278_p4 = scmp.lt.s32.totalorder %s3195_s18, 1  ;;  %v367_v2 = vld [vmem:[%s4517_s1 + $0x4] sm:$0xf]  ;;  %vm859_vm0 = vcmask 1041408  }
   0xd   : > { %v807_v1 = vunpack.c.l.b16 %v366_v0  ;;  %v1529_v3 = vunpack.c.l.b16 %v367_v2  ;;  %v3265_v6 = vld [vmem:[%s4517_s1 + $0x8] sm:$0xf]  ;;  %vm371_vm1 = vsmask.f32 3328  ;;  %vm372_vm2 = vsmask.f32 7440 }
   0xe   : > { %s4677_s18 = smov (!%p278_p4, %s3195_s18), 1  ;;  %v1400_v8 = vsel %vm859_vm0, %v367_v2, 0  ;;  %v1081_v10 = vsel %vm859_vm0, %v366_v0, 0  ;;  %v1690_v14 = vsel %vm859_vm0, %v3265_v6, 0  ;;  %vm3299_vm3 = vmor %vm371_vm1, %vm372_vm2  ;;  %vm810_vm4 = vcmask 31744  }
   0xf   : > { %v808_v4 = vpack.c.b16 %v807_v1, %v807_v1  ;;  %s3108_s26 = smul.u32 216, %s4677_s18  ;;  %v1530_v5 = vpack.c.b16 %v1529_v3, %v1529_v3  ;;  %vm1188_vm5 = vcmask 1042432   ;;  %vm1189_vm6 = vcmask 1046532   ;;  %s304_s17 = scalar_lea.vmem %s4520_s4, %s4677_s18 }
  0x10   : > { %vm3599_vm7 = vmor %vm1188_vm5, %vm1189_vm6  ;;  %vm2419_vm8 = vcmask 64512   ;;  %vm2489_vm9 = vcmask 57344   ;;  %s310_s24 = scalar_lea.vmem %s4521_s5, %s4677_s18  ;;  %s3086_s25 = sshll.u32 %s4677_s18, 3 }
  0x11   : > { %v809_v7 = vrot.slane %v808_v4, 2  ;;  %s3270_s6 = scalar_lea.vmem %s4516_s0, %s3108_s26  ;;  %v1531_v9 = vrot.slane %v1530_v5, 2  ;;  %s298_s28 = scalar_lea.vmem %s4519_s3, %s3086_s25 }
  0x12   : > { %v3276_v12 = vld [vmem:[%s3270_s6 + $0x30] sm:$0xf]  ;;  %v3279_v13 = vld [vmem:[%s3270_s6 + $0x34] sm:$0xf]  ;;  %v3284_v15 = vld [vmem:[%s3270_s6 + $0x38] sm:$0x1] }
  0x13   : > { %v861_v11 = vsel %vm859_vm0, %v809_v7, 0  ;;  %v471_v16 = vshrl.u32 %v3276_v12, 16  ;;  %v474_v17 = vshll.u32 %v3276_v12, 16  ;;  %v480_v18 = vshll.u32 %v3279_v13, 16  ;;  %v336_v21 = vld [vmem:[%s3270_s6 + $0x60] sm:$0xf] }
  0x14   : > { %3105 = vmatpush.bf16.msra.mxu1 %v861_v11  ;;  %3106 = vmatpush.bf16.msra.mxu2 %v861_v11  ;;  %v484_v19 = vshrl.u32 %v3279_v13, 16  ;;  %v490_v20 = vshll.u32 %v3284_v15, 16  ;;  %v337_v22 = vld [vmem:[%s3270_s6 + $0x64] sm:$0xf]  ;;  %v1536_v23 = vsel %vm859_vm0, %v1531_v9, 0  ;;  %v567_v30 = vshrl.u32 %v336_v21, 16 }
  0x15   : > { %3107 = vmatpush.bf16.msra.mxu3 %v861_v11  ;;  %870 = vmatpush.bf16.msra.mxu0 %v861_v11  ;;  %v473_v24 = vrot.slane %v471_v16, 4  ;;  %v476_v25 = vrot.slane %v474_v17, 5  ;;  %v482_v26 = vrot.slane %v480_v18, 5  ;;  %v338_v28 = vld [vmem:[%s3270_s6 + $0x68] sm:$0x1]  ;;  %v570_v31 = vshll.u32 %v336_v21, 16 }
  0x16   : > { %v486_v27 = vrot.slane %v484_v19, 4  ;;  %v492_v29 = vrot.slane %v490_v20, 5  ;;  %v576_v32 = vshll.u32 %v337_v22, 16  ;;  %v580_v35 = vshrl.u32 %v337_v22, 16  ;;  %v348_v37 = vld [vmem:[%s3270_s6 + $0x90] sm:$0xf] }
  0x17   : > { %v477_v33 = vor.u32 %v476_v25, %v473_v24  ;;  %v586_v36 = vshll.u32 %v338_v28, 16  ;;  %v349_v38 = vld [vmem:[%s3270_s6 + $0x94] sm:$0xf]  ;;  %v569_v40 = vrot.slane %v567_v30, 4  ;;  %v572_v41 = vrot.slane %v570_v31, 5 }
  0x18   : > { %1409 = vmatpush.bf16.msrb.mxu2 %v1400_v8  ;;  %1090 = vmatpush.bf16.msrb.mxu1 %v1081_v10  ;;  %v487_v34 = vor.u32 %v486_v27, %v482_v26  ;;  %v578_v42 = vrot.slane %v576_v32, 5  ;;  %v582_v45 = vrot.slane %v580_v35, 4  ;;  %v663_v48 = vshrl.u32 %v348_v37, 16  ;;  %v350_v54 = vld [vmem:[%s3270_s6 + $0x98] sm:$0x1] }
  0x19   : > { %1545 = vmatpush.bf16.msrb.mxu3 %v1536_v23  ;;  %1699 = vmatpush.bf16.msrb.mxu0 %v1690_v14  ;;  %v478_v43 = vrot.slane %v477_v33, 4  ;;  %v588_v46 = vrot.slane %v586_v36, 5  ;;  %v573_v47 = vor.u32 %v572_v41, %v569_v40  ;;  %v666_v49 = vshll.u32 %v348_v37, 16  ;;  %v3309_v0 = vld [vmem:[%s3270_s6] sm:$0xf] }
  0x1a   : > { %v488_v44 = vrot.slane %v487_v34, 4  ;;  %v672_v50 = vshll.u32 %v349_v38, 16  ;;  %v583_v53 = vor.u32 %v582_v45, %v578_v42  ;;  %v676_v55 = vshrl.u32 %v349_v38, 16  ;;  %v3316_v4 = vld [vmem:[%s3270_s6 + $0x4] sm:$0xf] }
  0x1b   : > { %v483_v51 = vsel %vm3299_vm3, %v478_v43, %v482_v26  ;;  %v574_v58 = vrot.slane %v573_v47, 4  ;;  %v665_v59 = vrot.slane %v663_v48, 4  ;;  %v668_v61 = vrot.slane %v666_v49, 5  ;;  %v3321_v10 = vld [vmem:[%s3270_s6 + $0x8] sm:$0x1] }
  0x1c   : > { %v493_v52 = vsel %vm3299_vm3, %v488_v44, %v492_v29  ;;  %v766_v56 = vunpack.c.l.b16 %v483_v51  ;;  %v584_v60 = vrot.slane %v583_v53, 4  ;;  %v674_v62 = vrot.slane %v672_v50, 5  ;;  %v3333_v26 = vld [vmem:[%s3270_s6 + $0x3c] sm:$0xf]  ;;  %v3340_v31 = vld [vmem:[%s3270_s6 + $0x40] sm:$0xf] }
  0x1d   : > { %v767_v57 = vunpack.c.l.b16 %v493_v52  ;;  %v678_v63 = vrot.slane %v676_v55, 4  ;;  %v579_v2 = vsel %vm3299_vm3, %v574_v58, %v578_v42  ;;  %v682_v3 = vshll.u32 %v350_v54, 16  ;;  %v3345_v35 = vld [vmem:[%s3270_s6 + $0x44] sm:$0x1]  ;;  %v3349_v40 = vld [vmem:[%s3270_s6 + $0x6c] sm:$0xf] }
  0x1e   : > { %v589_v5 = vsel %vm3299_vm3, %v584_v60, %v588_v46  ;;  %v774_v7 = vunpack.c.l.b16 %v579_v2  ;;  %v669_v8 = vor.u32 %v668_v61, %v665_v59  ;;  %v375_v16 = vshrl.u32 %v3309_v0, 16  ;;  %v3358_v49 = vld [vmem:[%s3270_s6 + $0x70] sm:$0xf]  ;;  %v3365_v53 = vld [vmem:[%s3270_s6 + $0x74] sm:$0x1] }
  0x1f   : > { %v3311_v1 = vpack.c.b16 %v767_v57, %v766_v56  ;;  %v679_v9 = vor.u32 %v678_v63, %v674_v62  ;;  %v775_v11 = vunpack.c.l.b16 %v589_v5  ;;  %v684_v14 = vrot.slane %v682_v3, 5 }
  0x20   : > { %v378_v17 = vshll.u32 %v3309_v0, 16  ;;  %v670_v18 = vrot.slane %v669_v8, 4  ;;  %v384_v20 = vshll.u32 %v3316_v4, 16  ;;  %v388_v21 = vshrl.u32 %v3316_v4, 16 }
  0x21   : > { %2854 = vmatmul.msk.bf16.vlgmr.msra.gmra.mxu1 %vm810_vm4, %v3311_v1  ;;  %v680_v19 = vrot.slane %v679_v9, 4  ;;  %v3329_v22 = vpack.c.b16 %v775_v11, %v774_v7  ;;  %v377_v23 = vrot.slane %v375_v16, 4  ;;  %v394_v25 = vshll.u32 %v3321_v10, 16  ;;  %v351_v7 = vld [vmem:[%s3270_s6 + $0x9c] sm:$0xf] }
  0x22   : > { %v380_v24 = vrot.slane %v378_v17, 5  ;;  %v675_v27 = vsel %vm3299_vm3, %v670_v18, %v674_v62  ;;  %v386_v29 = vrot.slane %v384_v20, 5  ;;  %v390_v30 = vrot.slane %v388_v21, 4 }
  0x23   : > { %4566 = vst [vmem:[#allocation2_spill] sm:$0xff] %v3329_v22  ;;  %v685_v28 = vsel %vm3299_vm3, %v680_v19, %v684_v14  ;;  %2858 = vmatmul.msk.bf16.vlgmr.msra.gmra.mxu2 %vm810_vm4, %v3329_v22  ;;  %v782_v32 = vunpack.c.l.b16 %v675_v27  ;;  %v396_v37 = vrot.slane %v394_v25, 5  ;;  %v495_v38 = vshrl.u32 %v3333_v26, 16  ;;  %v352_v14 = vld [vmem:[%s3270_s6 + $0xa0] sm:$0xf] }
  0x24   : > { %v783_v33 = vunpack.c.l.b16 %v685_v28  ;;  %v381_v34 = vor.u32 %v380_v24, %v377_v23  ;;  %v391_v36 = vor.u32 %v390_v30, %v386_v29  ;;  %v498_v43 = vshll.u32 %v3333_v26, 16  ;;  %v353_v23 = vld [vmem:[%s3270_s6 + $0xa4] sm:$0x1] }
  0x25   : > { %v504_v44 = vshll.u32 %v3340_v31, 16  ;;  %v497_v46 = vrot.slane %v495_v38, 4  ;;  %v508_v47 = vshrl.u32 %v3340_v31, 16  ;;  %v514_v48 = vshll.u32 %v3345_v35, 16 }
  0x26   : > { %v3351_v41 = vpack.c.b16 %v783_v33, %v782_v32  ;;  %v382_v42 = vrot.slane %v381_v34, 4  ;;  %v392_v45 = vrot.slane %v391_v36, 4  ;;  %v500_v51 = vrot.slane %v498_v43, 5 }
  0x27   : > { %v506_v52 = vrot.slane %v504_v44, 5  ;;  %v591_v54 = vshrl.u32 %v3349_v40, 16  ;;  %v510_v57 = vrot.slane %v508_v47, 4  ;;  %v516_v58 = vrot.slane %v514_v48, 5  ;;  %v3383_v44 = vld [vmem:[%s3270_s6 + $0xc] sm:$0xf] }
  0x28   : > { %4567 = vst [vmem:[#allocation3_spill] sm:$0xff] %v3351_v41  ;;  %2862 = vmatmul.msk.bf16.vlgmr.msra.gmra.mxu3 %vm810_vm4, %v3351_v41  ;;  %v387_v50 = vsel %vm3299_vm3, %v382_v42, %v386_v29  ;;  %v397_v55 = vsel %vm3299_vm3, %v392_v45, %v396_v37  ;;  %v501_v60 = vor.u32 %v500_v51, %v497_v46  ;;  %v594_v62 = vshll.u32 %v3349_v40, 16  ;;  %v3390_v48 = vld [vmem:[%s3270_s6 + $0x10] sm:$0xf] }
  0x29   : > { %v758_v56 = vunpack.c.l.b16 %v387_v50  ;;  %v759_v59 = vunpack.c.l.b16 %v397_v55  ;;  %v593_v61 = vrot.slane %v591_v54, 4  ;;  %v511_v63 = vor.u32 %v510_v57, %v506_v52  ;;  %v3393_v50 = vld [vmem:[%s3270_s6 + $0x14] sm:$0x1] }
  0x2a   : > { %v600_v2 = vshll.u32 %v3358_v49, 16  ;;  %v604_v3 = vshrl.u32 %v3358_v49, 16  ;;  %v610_v5 = vshll.u32 %v3365_v53, 16  ;;  %v502_v9 = vrot.slane %v501_v60, 4 }
  0x2b   : > { %v790_v8 = vpack.c.b16 %v759_v59, %v758_v56  ;;  %v596_v11 = vrot.slane %v594_v62, 5  ;;  %v512_v16 = vrot.slane %v511_v63, 4  ;;  %v687_v24 = vshrl.u32 %v351_v7, 16 }
  0x2c   : > { %v602_v17 = vrot.slane %v600_v2, 5  ;;  %v606_v18 = vrot.slane %v604_v3, 4  ;;  %v612_v19 = vrot.slane %v610_v5, 5  ;;  %v507_v20 = vsel %vm3299_vm3, %v502_v9, %v506_v52  ;;  %v3405_v2 = vld [vmem:[%s3270_s6 + $0x48] sm:$0xf] }
  0x2d   : > { %2850 = vmatmul.msk.bf16.vlgmr.msra.gmra.mxu0 %vm810_vm4, %v790_v8  ;;  %v597_v21 = vor.u32 %v596_v11, %v593_v61  ;;  %v690_v25 = vshll.u32 %v351_v7, 16  ;;  %v517_v27 = vsel %vm3299_vm3, %v512_v16, %v516_v58  ;;  %v768_v28 = vunpack.c.l.b16 %v507_v20  ;;  %v3412_v9 = vld [vmem:[%s3270_s6 + $0x4c] sm:$0xf]  ;;  %v3417_v20 = vld [vmem:[%s3270_s6 + $0x50] sm:$0x1] }
  0x2e   : > { %v607_v29 = vor.u32 %v606_v18, %v602_v17  ;;  %v696_v30 = vshll.u32 %v352_v14, 16  ;;  %v769_v32 = vunpack.c.l.b16 %v517_v27  ;;  %v689_v34 = vrot.slane %v687_v24, 4 }
  0x2f   : > { %v598_v33 = vrot.slane %v597_v21, 4  ;;  %v692_v36 = vrot.slane %v690_v25, 5  ;;  %v700_v42 = vshrl.u32 %v352_v14, 16  ;;  %v706_v43 = vshll.u32 %v353_v23, 16 }
  0x30   : > { %v608_v37 = vrot.slane %v607_v29, 4  ;;  %v698_v38 = vrot.slane %v696_v30, 5  ;;  %v3385_v45 = vpack.c.b16 %v769_v32, %v768_v28  ;;  %v399_v58 = vshrl.u32 %v3383_v44, 16  ;;  %v3426_v29 = vld [vmem:[%s3270_s6 + $0x78] sm:$0xf] }
  0x31   : > { %v603_v46 = vsel %vm3299_vm3, %v598_v33, %v602_v17  ;;  %v693_v47 = vor.u32 %v692_v36, %v689_v34  ;;  %v702_v54 = vrot.slane %v700_v42, 4  ;;  %v708_v55 = vrot.slane %v706_v43, 5 }
  0x32   : > { %v613_v51 = vsel %vm3299_vm3, %v608_v37, %v612_v19  ;;  %v776_v52 = vunpack.c.l.b16 %v603_v46  ;;  %2855 = vmatmul.msk.bf16.gmra.mxu1 %vm810_vm4, %v3385_v45  ;;  %v402_v59 = vshll.u32 %v3383_v44, 16  ;;  %v408_v61 = vshll.u32 %v3390_v48, 16 }
  0x33   : > { %v777_v56 = vunpack.c.l.b16 %v613_v51  ;;  %v694_v57 = vrot.slane %v693_v47, 4  ;;  %v703_v60 = vor.u32 %v702_v54, %v698_v38  ;;  %v412_v62 = vshrl.u32 %v3390_v48, 16  ;;  %v3434_v51 = vld [vmem:[%s3270_s6 + $0x7c] sm:$0xf] }
  0x34   : > { %v418_v63 = vshll.u32 %v3393_v50, 16  ;;  %v401_v7 = vrot.slane %v399_v58, 4  ;;  %v404_v8 = vrot.slane %v402_v59, 5  ;;  %v410_v16 = vrot.slane %v408_v61, 5 }
  0x35   : > { %v3407_v3 = vpack.c.b16 %v777_v56, %v776_v52  ;;  %v699_v5 = vsel %vm3299_vm3, %v694_v57, %v698_v38  ;;  %v704_v11 = vrot.slane %v703_v60, 4  ;;  %v414_v17 = vrot.slane %v412_v62, 4  ;;  %v3437_v52 = vld [vmem:[%s3270_s6 + $0x80] sm:$0x1] }
  0x36   : > { %v784_v14 = vunpack.c.l.b16 %v699_v5  ;;  %v405_v18 = vor.u32 %v404_v8, %v401_v7  ;;  %v420_v19 = vrot.slane %v418_v63, 5  ;;  %v519_v21 = vshrl.u32 %v3405_v2, 16 }
  0x37   : > { %2859 = vmatmul.msk.bf16.gmra.mxu2 %vm810_vm4, %v3407_v3  ;;  %v522_v23 = vshll.u32 %v3405_v2, 16  ;;  %v709_v24 = vsel %vm3299_vm3, %v704_v11, %v708_v55  ;;  %v415_v25 = vor.u32 %v414_v17, %v410_v16  ;;  %v528_v27 = vshll.u32 %v3412_v9, 16  ;;  %v3449_v11 = vld [vmem:[%s3270_s6 + $0xa8] sm:$0xf] }
  0x38   : > { %v532_v28 = vshrl.u32 %v3412_v9, 16  ;;  %v785_v30 = vunpack.c.l.b16 %v709_v24  ;;  %v406_v32 = vrot.slane %v405_v18, 4  ;;  %v521_v33 = vrot.slane %v519_v21, 4  ;;  %4569 = vst [vmem:[#allocation5_spill] sm:$0xff] %v3449_v11 }
  0x39   : > { %v524_v34 = vrot.slane %v522_v23, 5  ;;  %v416_v36 = vrot.slane %v415_v25, 4  ;;  %v530_v37 = vrot.slane %v528_v27, 5  ;;  %v538_v42 = vshll.u32 %v3417_v20, 16  ;;  %v3462_v27 = vld [vmem:[%s3270_s6 + $0xb0] sm:$0x1] }
  0x3a   : > { %v534_v38 = vrot.slane %v532_v28, 4  ;;  %v3429_v43 = vpack.c.b16 %v785_v30, %v784_v14  ;;  %v411_v46 = vsel %vm3299_vm3, %v406_v32, %v410_v16  ;;  %v615_v54 = vshrl.u32 %v3426_v29, 16  ;;  %4571 = vst [vmem:[#allocation7_spill] sm:$0xff] %v3462_v27 }
  0x3b   : > { %v525_v47 = vor.u32 %v524_v34, %v521_v33  ;;  %v421_v55 = vsel %vm3299_vm3, %v416_v36, %v420_v19  ;;  %v760_v56 = vunpack.c.l.b16 %v411_v46  ;;  %v540_v58 = vrot.slane %v538_v42, 5  ;;  %v3457_v19 = vld [vmem:[%s3270_s6 + $0xac] sm:$0xf] }
  0x3c   : > { %4568 = vst [vmem:[#allocation4_spill] sm:$0xff] %v3429_v43  ;;  %v535_v57 = vor.u32 %v534_v38, %v530_v37  ;;  %2863 = vmatmul.msk.bf16.gmra.mxu3 %vm810_vm4, %v3429_v43  ;;  %v761_v59 = vunpack.c.l.b16 %v421_v55  ;;  %v617_v61 = vrot.slane %v615_v54, 4  ;;  %v618_v62 = vshll.u32 %v3426_v29, 16  ;;  %v3471_v38 = vld [vmem:[%s3270_s6 + $0x18] sm:$0xf] }
  0x3d   : > { %v526_v60 = vrot.slane %v525_v47, 4  ;;  %v624_v5 = vshll.u32 %v3434_v51, 16  ;;  %v628_v7 = vshrl.u32 %v3434_v51, 16  ;;  %v634_v8 = vshll.u32 %v3437_v52, 16  ;;  %4570 = vst [vmem:[#allocation6_spill] sm:$0xff] %v3457_v19 }
  0x3e   : > { %v536_v63 = vrot.slane %v535_v57, 4  ;;  %v1825_v14 = vunpack.c.l.b16 %v3265_v6  ;;  %v3452_v16 = vpack.c.b16 %v761_v59, %v760_v56  ;;  %v620_v18 = vrot.slane %v618_v62, 5  ;;  %v3477_v59 = vld [vmem:[%s3270_s6 + $0x1c] sm:$0xf]  ;;  %v3573_v43 = vld [vmem:[%s3270_s6 + $0x2c] sm:$0x1] }
  0x3f   : > { %v531_v17 = vsel %vm3299_vm3, %v526_v60, %v530_v37  ;;  %v626_v24 = vrot.slane %v624_v5, 5  ;;  %v630_v25 = vrot.slane %v628_v7, 4  ;;  %v636_v30 = vrot.slane %v634_v8, 5 }
  0x40   : > { %v541_v21 = vsel %vm3299_vm3, %v536_v63, %v540_v58  ;;  %v770_v23 = vunpack.c.l.b16 %v531_v17  ;;  %2851 = vmatmul.msk.bf16.gmra.mxu0 %vm810_vm4, %v3452_v16  ;;  %v621_v28 = vor.u32 %v620_v18, %v617_v61  ;;  %v711_v32 = vshrl.u32 %v3449_v11, 16  ;;  %v3486_v63 = vld [vmem:[%s3270_s6 + $0x20] sm:$0x1] }
  0x41   : > { %v771_v6 = vunpack.c.l.b16 %v541_v21  ;;  %v631_v33 = vor.u32 %v630_v25, %v626_v24  ;;  %v714_v34 = vshll.u32 %v3449_v11, 16  ;;  %v720_v36 = vshll.u32 %v3457_v19, 16 }
  0x42   : > { %v724_v37 = vshrl.u32 %v3457_v19, 16  ;;  %v622_v46 = vrot.slane %v621_v28, 4  ;;  %v713_v47 = vrot.slane %v711_v32, 4  ;;  %v730_v54 = vshll.u32 %v3462_v27, 16 }
  0x43   : > { %v3473_v42 = vpack.c.b16 %v771_v6, %v770_v23  ;;  %v632_v55 = vrot.slane %v631_v33, 4  ;;  %v716_v56 = vrot.slane %v714_v34, 5  ;;  %v722_v57 = vrot.slane %v720_v36, 5 }
  0x44   : > { %v726_v58 = vrot.slane %v724_v37, 4  ;;  %v3479_v60 = vpack.c.b16 %v1825_v14, %v1825_v14  ;;  %v627_v61 = vsel %vm3299_vm3, %v622_v46, %v626_v24  ;;  %v732_v62 = vrot.slane %v730_v54, 5  ;;  %v3492_v14 = vld [vmem:[%s3270_s6 + $0x54] sm:$0xf]  ;;  %v3501_v37 = vld [vmem:[%s3270_s6 + $0x58] sm:$0xf] }
  0x45   : > { %4572 = vst [vmem:[#allocation8_spill] sm:$0xff] %v3473_v42  ;;  %2856 = vmatmul.msk.bf16.gmra.mxu1 %vm810_vm4, %v3473_v42  ;;  %v423_v5 = vshrl.u32 %v3471_v38, 16  ;;  %v637_v7 = vsel %vm3299_vm3, %v632_v55, %v636_v30  ;;  %v778_v8 = vunpack.c.l.b16 %v627_v61  ;;  %v717_v17 = vor.u32 %v716_v56, %v713_v47  ;;  %v3512_v61 = vld [vmem:[%s3270_s6 + $0x84] sm:$0xf] }
  0x46   : > { %v727_v18 = vor.u32 %v726_v58, %v722_v57  ;;  %v779_v21 = vunpack.c.l.b16 %v637_v7  ;;  %v426_v25 = vshll.u32 %v3471_v38, 16  ;;  %v432_v24 = vshll.u32 %v3477_v59, 16  ;;  %v3509_v58 = vld [vmem:[%s3270_s6 + $0x5c] sm:$0x1]  ;;  %4573 = vst [vmem:[#allocation9_spill] sm:$0xff] %v3512_v61 }
  0x47   : > { %v425_v23 = vrot.slane %v423_v5, 4  ;;  %v718_v6 = vrot.slane %v717_v17, 4  ;;  %v436_v32 = vshrl.u32 %v3477_v59, 16  ;;  %v442_v30 = vshll.u32 %v3486_v63, 16 }
  0x48   : > { %v728_v28 = vrot.slane %v727_v18, 4  ;;  %v3498_v33 = vpack.c.b16 %v779_v21, %v778_v8  ;;  %v428_v34 = vrot.slane %v426_v25, 5  ;;  %v434_v36 = vrot.slane %v432_v24, 5 }
  0x49   : > { %v543_v46 = vshrl.u32 %v3492_v14, 16  ;;  %v723_v47 = vsel %vm3299_vm3, %v718_v6, %v722_v57  ;;  %v438_v55 = vrot.slane %v436_v32, 4  ;;  %v444_v56 = vrot.slane %v442_v30, 5 }
  0x4a   : > { %v733_v54 = vsel %vm3299_vm3, %v728_v28, %v732_v62  ;;  %2860 = vmatmul.msk.bf16.gmra.mxu2 %vm810_vm4, %v3498_v33  ;;  %v786_v5 = vunpack.c.l.b16 %v723_v47  ;;  %v429_v8 = vor.u32 %v428_v34, %v425_v23  ;;  %v546_v57 = vshll.u32 %v3492_v14, 16  ;;  %v3524_v34 = vld [vmem:[%s3270_s6 + $0x88] sm:$0xf] }
  0x4b   : > { %v787_v7 = vunpack.c.l.b16 %v733_v54  ;;  %v545_v17 = vrot.slane %v543_v46, 4  ;;  %v439_v18 = vor.u32 %v438_v55, %v434_v36  ;;  %v552_v62 = vshll.u32 %v3501_v37, 16  ;;  %4575 = vst [vmem:[#allocation11_spill] sm:$0xff] %v3524_v34  ;;  %v3531_v55 = vld [vmem:[%s3270_s6 + $0x8c] sm:$0x1] }
  0x4c   : > { %v556_v21 = vshrl.u32 %v3501_v37, 16  ;;  %v430_v24 = vrot.slane %v429_v8, 4  ;;  %v562_v6 = vshll.u32 %v3509_v58, 16  ;;  %v639_v28 = vshrl.u32 %v3512_v61, 16  ;;  %4576 = vst [vmem:[#allocation12_spill] sm:$0xff] %v3531_v55 }
  0x4d   : > { %v3519_v25 = vpack.c.b16 %v787_v7, %v786_v5  ;;  %v440_v32 = vrot.slane %v439_v18, 4  ;;  %v548_v30 = vrot.slane %v546_v57, 5  ;;  %v554_v47 = vrot.slane %v552_v62, 5 }
  0x4e   : > { %v558_v23 = vrot.slane %v556_v21, 4  ;;  %v435_v46 = vsel %vm3299_vm3, %v430_v24, %v434_v36  ;;  %v564_v54 = vrot.slane %v562_v6, 5  ;;  %v641_v5 = vrot.slane %v639_v28, 4  ;;  %v3539_v24 = vld [vmem:[%s3270_s6 + $0xb4] sm:$0xf] }
  0x4f   : > { %4574 = vst [vmem:[#allocation10_spill] sm:$0xff] %v3519_v25  ;;  %2864 = vmatmul.msk.bf16.gmra.mxu3 %vm810_vm4, %v3519_v25  ;;  %v642_v7 = vshll.u32 %v3512_v61, 16  ;;  %v445_v8 = vsel %vm3299_vm3, %v440_v32, %v444_v56  ;;  %v762_v18 = vunpack.c.l.b16 %v435_v46  ;;  %v549_v57 = vor.u32 %v548_v30, %v545_v17  ;;  %v3553_v6 = vld [vmem:[%s3270_s6 + $0xbc] sm:$0x1] }
  0x50   : > { %v559_v62 = vor.u32 %v558_v23, %v554_v47  ;;  %v763_v21 = vunpack.c.l.b16 %v445_v8  ;;  %v648_v25 = vshll.u32 %v3524_v34, 16  ;;  %v652_v36 = vshrl.u32 %v3524_v34, 16  ;;  %4577 = vst [vmem:[#allocation13_spill] sm:$0xff] %v3539_v24  ;;  %v3546_v23 = vld [vmem:[%s3270_s6 + $0xb8] sm:$0xf] }
  0x51   : > { %v644_v11 = vrot.slane %v642_v7, 5  ;;  %v550_v28 = vrot.slane %v549_v57, 4  ;;  %v658_v19 = vshll.u32 %v3531_v55, 16  ;;  %4578 = vst [vmem:[#allocation14_spill] sm:$0xff] %v3546_v23  ;;  %v735_v57 = vshrl.u32 %v3539_v24, 16 }
  0x52   : > { %v560_v27 = vrot.slane %v559_v62, 4  ;;  %v3543_v56 = vpack.c.b16 %v763_v21, %v762_v18  ;;  %v650_v17 = vrot.slane %v648_v25, 5  ;;  %v654_v30 = vrot.slane %v652_v36, 4  ;;  %4579 = vst [vmem:[#allocation15_spill] sm:$0xff] %v3553_v6 }
  0x53   : > { %v645_v32 = vor.u32 %v644_v11, %v641_v5  ;;  %v555_v46 = vsel %vm3299_vm3, %v550_v28, %v554_v47  ;;  %v660_v8 = vrot.slane %v658_v19, 5  ;;  %v737_v62 = vrot.slane %v735_v57, 4 }
  0x54   : > { %v565_v7 = vsel %vm3299_vm3, %v560_v27, %v564_v54  ;;  %2852 = vmatmul.msk.bf16.gmra.mxu0 %vm810_vm4, %v3543_v56  ;;  %v772_v11 = vunpack.c.l.b16 %v555_v46  ;;  %v655_v18 = vor.u32 %v654_v30, %v650_v17  ;;  %v738_v47 = vshll.u32 %v3539_v24, 16  ;;  %v3562_v27 = vld [vmem:[%s3270_s6 + $0x24] sm:$0xf] }
  0x55   : > { %v773_v25 = vunpack.c.l.b16 %v565_v7  ;;  %v646_v5 = vrot.slane %v645_v32, 4  ;;  %v744_v21 = vshll.u32 %v3546_v23, 16  ;;  %v748_v19 = vshrl.u32 %v3546_v23, 16  ;;  %v3570_v32 = vld [vmem:[%s3270_s6 + $0x28] sm:$0xf] }
  0x56   : > { %v656_v28 = vrot.slane %v655_v18, 4  ;;  %v754_v46 = vshll.u32 %v3553_v6, 16  ;;  %v740_v7 = vrot.slane %v738_v47, 5  ;;  %v1827_v23 = vrot.slane %v3479_v60, 2 }
  0x57   : > { %v3564_v54 = vpack.c.b16 %v773_v25, %v772_v11  ;;  %v651_v36 = vsel %vm3299_vm3, %v646_v5, %v650_v17  ;;  %v746_v57 = vrot.slane %v744_v21, 5  ;;  %v750_v24 = vrot.slane %v748_v19, 4 }
  0x58   : > { %v780_v30 = vunpack.c.l.b16 %v651_v36  ;;  %v661_v11 = vsel %vm3299_vm3, %v656_v28, %v660_v8  ;;  %v756_v17 = vrot.slane %v754_v46, 5  ;;  %v447_v25 = vshrl.u32 %v3562_v27, 16 }
  0x59   : > { %4580 = vst [vmem:[#allocation16_spill] sm:$0xff] %v3564_v54  ;;  %2857 = vmatmul.msk.bf16.gmra.mxu1 %vm810_vm4, %v3564_v54  ;;  %v781_v5 = vunpack.c.l.b16 %v661_v11  ;;  %v741_v18 = vor.u32 %v740_v7, %v737_v62  ;;  %v751_v6 = vor.u32 %v750_v24, %v746_v57  ;;  %v450_v47 = vshll.u32 %v3562_v27, 16  ;;  %v369_v24 = vld [vmem:[%s4517_s1 + $0xc] sm:$0xf] }
  0x5a   : > { %v449_v21 = vrot.slane %v447_v25, 4  ;;  %v456_v19 = vshll.u32 %v3570_v32, 16  ;;  %v460_v36 = vshrl.u32 %v3570_v32, 16  ;;  %v466_v60 = vshll.u32 %v3573_v43, 16 }
  0x5b   : > { %v3585_v41 = vpack.c.b16 %v781_v5, %v780_v30  ;;  %v742_v61 = vrot.slane %v741_v18, 4  ;;  %v752_v55 = vrot.slane %v751_v6, 4  ;;  %v452_v8 = vrot.slane %v450_v47, 5  ;;  %v370_v6 = vld [vmem:[%s4517_s1 + $0x10] sm:$0x3] }
  0x5c   : > { %v458_v28 = vrot.slane %v456_v19, 5  ;;  %v462_v46 = vrot.slane %v460_v36, 4  ;;  %v468_v34 = vrot.slane %v466_v60, 5  ;;  %v2946_v47 = vrot.slane %v3309_v0, 9 }
  0x5d   : > { %4581 = vst [vmem:[#allocation17_spill] sm:$0xff] %v3585_v41  ;;  %2861 = vmatmul.msk.bf16.gmra.mxu2 %vm810_vm4, %v3585_v41  ;;  %v747_v62 = vsel %vm3299_vm3, %v742_v61, %v746_v57  ;;  %v757_v30 = vsel %vm3299_vm3, %v752_v55, %v756_v17  ;;  %v453_v7 = vor.u32 %v452_v8, %v449_v21  ;;  %v1193_v61 = vrot.slane %v3316_v4, 5 }
  0x5e   : > { %v788_v11 = vunpack.c.l.b16 %v747_v62  ;;  %v789_v25 = vunpack.c.l.b16 %v757_v30  ;;  %v463_v5 = vor.u32 %v462_v46, %v458_v28  ;;  %v1964_v55 = vsel %vm859_vm0, %v369_v24, 0 }
  0x5f   : > { %v454_v19 = vrot.slane %v453_v7, 4  ;;  %v2115_v57 = vunpack.c.l.b16 %v369_v24  ;;  %1973 = vmatpush.bf16.msra.mxu2 %v1964_v55  ;;  %v1832_v36 = vsel %vm859_vm0, %v1827_v23, 0  ;;  %v2260_v60 = vsel %vm859_vm0, %v370_v6, 0 }
  0x60   : > { %v3606_v17 = vpack.c.b16 %v789_v25, %v788_v11  ;;  %v464_v21 = vrot.slane %v463_v5, 4  ;;  %v1194_v0 = vsel %vm3599_vm7, %v2946_v47, %v1193_v61  ;;  %v1195_v46 = vrot.slane %v1193_v61, 4  ;;  %1841 = vmatpush.bf16.msra.mxu1 %v1832_v36  ;;  %2269 = vmatpush.bf16.msra.mxu0 %v2260_v60  ;;  %v3087_v5 = vld [vmem:[%s3270_s6] sm:$0xff]  ;;  %v3088_v36 = vld [vmem:[%s3270_s6 + $0xc] sm:$0xff] }
  0x61   : > { %v459_v8 = vsel %vm3299_vm3, %v454_v19, %v458_v28  ;;  %v2116_v4 = vpack.c.b16 %v2115_v57, %v2115_v57  ;;  %v1303_v62 = vunpack.c.l.b16 %v1194_v0  ;;  %v2947_v30 = vrot.slane %v3383_v44, 9 }
  0x62   : > { %2865 = vmatmul.msk.bf16.gmra.mxu3 %vm810_vm4, %v3606_v17  ;;  %v469_v24 = vsel %vm3299_vm3, %v464_v21, %v468_v34  ;;  %v764_v23 = vunpack.c.l.b16 %v459_v8  ;;  %v4584_v28 = vrot.slane %v3321_v10, 5  ;;  %v1200_v25 = vrot.slane %v3390_v48, 5  ;;  %v3648_v8 = vld [vmem:[%s3270_s6 + $0x18] sm:$0xff] }
  0x63   : > { %v765_v7 = vunpack.c.l.b16 %v469_v24  ;;  %v2117_v11 = vrot.slane %v2116_v4, 2  ;;  %v1203_v19 = vrot.slane %v3393_v50, 5  ;;  %v1207_v60 = vrot.slane %v3477_v59, 5 }
  0x64   : > { %v1197_v6 = vsel %vm3599_vm7, %v1195_v46, %v4584_v28  ;;  %v1201_v44 = vsel %vm3599_vm7, %v2947_v30, %v1200_v25  ;;  %v1202_v55 = vrot.slane %v1200_v25, 4  ;;  %v2948_v0 = vrot.slane %v3471_v38, 9 }
  0x65   : > { %v1304_v47 = vunpack.c.l.b16 %v1197_v6  ;;  %v3626_v61 = vpack.c.b16 %v765_v7, %v764_v23  ;;  %v2122_v34 = vsel %vm859_vm0, %v2117_v11, 0  ;;  %v1305_v57 = vunpack.c.l.b16 %v1201_v44 }
  0x66   : > { %2131 = vmatpush.bf16.msra.mxu3 %v2122_v34  ;;  %v1204_v48 = vsel %vm3599_vm7, %v1202_v55, %v1203_v19  ;;  %v1209_v46 = vrot.slane %v1207_v60, 4  ;;  %v1210_v4 = vrot.slane %v3486_v63, 5  ;;  %v1214_v63 = vrot.slane %v3570_v32, 5 }
  0x67   : > { %v1335_v10 = vpack.c.b16 %v1304_v47, %v1303_v62  ;;  %2853 = vmatmul.msk.bf16.gmra.mxu0 %vm810_vm4, %v3626_v61  ;;  %v1306_v50 = vunpack.c.l.b16 %v1204_v48  ;;  %v3668_v62 = vld [vmem:[%s3270_s6 + $0x24] sm:$0xff]  ;;  %v2949_v30 = vrot.slane %v3562_v27, 9  ;;  %v1217_v28 = vrot.slane %v3573_v43, 5  ;;  %v3690_v47 = vld [vmem:[%s3270_s6 + $0x30] sm:$0xff] }
  0x68   : > { %v1211_v59 = vsel %vm3599_vm7, %v1209_v46, %v1210_v4  ;;  %v1216_v7 = vrot.slane %v1214_v63, 4  ;;  %v1221_v43 = vrot.slane %v3279_v13, 5  ;;  %v2950_v19 = vrot.slane %v3276_v12, 9 }
  0x69   : > { %2930 = vmatmul.msk.bf16.vlgmr.msrb.gmra.mxu1 %vm810_vm4, %v3087_v5  ;;  %v3636_v21 = vpack.c.b16 %v1306_v50, %v1305_v57  ;;  %v1308_v23 = vunpack.c.l.b16 %v1211_v59  ;;  %v1215_v6 = vsel %vm3599_vm7, %v2949_v30, %v1214_v63  ;;  %v1224_v44 = vrot.slane %v3284_v15, 5 }
  0x6a   : > { %v1218_v32 = vsel %vm3599_vm7, %v1216_v7, %v1217_v28  ;;  %v1309_v11 = vunpack.c.l.b16 %v1215_v6  ;;  %v1223_v34 = vrot.slane %v1221_v43, 4  ;;  %v1222_v55 = vsel %vm3599_vm7, %v2950_v19, %v1221_v43 }
  0x6b   : > { %v1310_v25 = vunpack.c.l.b16 %v1218_v32  ;;  %v2951_v46 = vrot.slane %v3333_v26, 9  ;;  %v1235_v32 = vrot.slane %v3412_v9, 5  ;;  %v2952_v43 = vrot.slane %v3405_v2, 9 }
  0x6c   : > { %v1225_v13 = vsel %vm3599_vm7, %v1223_v34, %v1224_v44  ;;  %v1238_v34 = vrot.slane %v3417_v20, 5 }
  0x6d   : > { %2962 = vmatmul.msk.bf16.vlgmr.msrb.gmra.mxu2 %vm810_vm4, %v1335_v10  ;;  %v3682_v27 = vpack.c.b16 %v1310_v25, %v1309_v11  ;;  %v1311_v10 = vunpack.c.l.b16 %v1222_v55  ;;  %v1312_v57 = vunpack.c.l.b16 %v1225_v13  ;;  %v3752_v25 = vld [vmem:[%s3270_s6 + $0x48] sm:$0xff]  ;;  %v1237_v19 = vrot.slane %v1235_v32, 4 }
  0x6e   : > { %v1236_v9 = vsel %vm3599_vm7, %v2952_v43, %v1235_v32  ;;  %v1245_v32 = vrot.slane %v3509_v58, 5 }
  0x6f   : > { %v3710_v15 = vpack.c.b16 %v1312_v57, %v1311_v10  ;;  %v1239_v13 = vsel %vm3599_vm7, %v1237_v19, %v1238_v34  ;;  %v1315_v2 = vunpack.c.l.b16 %v1236_v9 }
  0x70   : > { %v1316_v57 = vunpack.c.l.b16 %v1239_v13 }
  0x72   : > { %2982 = vmatmul.msk.bf16.vlgmr.msrb.gmra.mxu3 %vm810_vm4, %v3088_v36 }
  0x77   : > { %2998 = vmatmul.msk.bf16.vlgmr.msrb.gmra.mxu0 %vm810_vm4, %v3452_v16  ;;  %v1208_v16 = vsel %vm3599_vm7, %v2948_v0, %v1207_v60  ;;  %v3718_v0 = vld [vmem:[%s3270_s6 + $0x3c] sm:$0xff] }
  0x78   : > { %v1307_v24 = vunpack.c.l.b16 %v1208_v16  ;;  %v1231_v16 = vrot.slane %v3345_v35, 5 }
  0x79   : > { %2931 = vmatmul.msk.bf16.gmra.mxu1 %vm810_vm4, %v3088_v36  ;;  %v1228_v36 = vrot.slane %v3340_v31, 5 }
  0x7a   : > { %v3662_v38 = vpack.c.b16 %v1308_v23, %v1307_v24 }
  0x7b   : > { %v1230_v4 = vrot.slane %v1228_v36, 4  ;;  %v1229_v31 = vsel %vm3599_vm7, %v2951_v46, %v1228_v36  ;;  %v3776_v46 = vpack.c.b16 %v1316_v57, %v1315_v2 }
  0x7c   : > { %v1313_v30 = vunpack.c.l.b16 %v1229_v31 }
  0x7d   : > { %2963 = vmatmul.msk.bf16.gmra.mxu2 %vm810_vm4, %v3636_v21  ;;  %v1232_v23 = vsel %vm3599_vm7, %v1230_v4, %v1231_v16  ;;  %4589 = vst [vmem:[#allocation22_spill] sm:$0xff] %v3776_v46  ;;  %v1242_v4 = vrot.slane %v3501_v37, 5 }
  0x7e   : > { %v1314_v35 = vunpack.c.l.b16 %v1232_v23  ;;  %v3786_v23 = vld [vmem:[%s3270_s6 + $0x54] sm:$0xff] }
  0x7f   : > { %4590 = vst [vmem:[#allocation23_spill] sm:$0xff] %v3786_v23 }
  0x80   : > { %v3742_v28 = vpack.c.b16 %v1314_v35, %v1313_v30  ;;  %v2953_v30 = vrot.slane %v3492_v14, 9  ;;  %v1244_v35 = vrot.slane %v1242_v4, 4 }
  0x82   : > { %2983 = vmatmul.msk.bf16.gmra.mxu3 %vm810_vm4, %v3648_v8  ;;  %v1243_v37 = vsel %vm3599_vm7, %v2953_v30, %v1242_v4  ;;  %v1246_v34 = vsel %vm3599_vm7, %v1244_v35, %v1245_v32  ;;  %v3171_v4 = vld [vmem:[%s3270_s6 + $0x64] sm:$0xf] }
  0x83   : > { %v1317_v9 = vunpack.c.l.b16 %v1243_v37  ;;  %v1318_v58 = vunpack.c.l.b16 %v1246_v34  ;;  %v1249_v30 = vrot.slane %v3171_v4, 5  ;;  %v3172_v37 = vld [vmem:[%s3270_s6 + $0x68] sm:$0x1] }
  0x84   : > { %v1252_v34 = vrot.slane %v3172_v37, 5 }
  0x85   : > { %v3808_v2 = vpack.c.b16 %v1318_v58, %v1317_v9 }
  0x87   : > { %2999 = vmatmul.msk.bf16.gmra.mxu0 %vm810_vm4, %v3543_v56  ;;  %4592 = vst [vmem:[#allocation25_spill] sm:$0xff] %v3808_v2 }
  0x89   : > { %2932 = vmatmul.msk.bf16.gmra.mxu1 %vm810_vm4, %v3648_v8 }
  0x8d   : > { %2964 = vmatmul.msk.bf16.gmra.mxu2 %vm810_vm4, %v3662_v38 }
  0x92   : > { %2984 = vmatmul.msk.bf16.gmra.mxu3 %vm810_vm4, %v3668_v62 }
  0x97   : > { %3000 = vmatmul.msk.bf16.gmra.mxu0 %vm810_vm4, %v3626_v61 }
  0x99   : > { %2933 = vmatmul.msk.bf16.gmra.mxu1 %vm810_vm4, %v3668_v62 }
  0x9d   : > { %2965 = vmatmul.msk.bf16.gmra.mxu2 %vm810_vm4, %v3682_v27 }
  0x9e   : > { %v3685_v5 = vpop.f32.mrf.mxu1 }
  0xa2   : > { %2985 = vmatmul.msk.bf16.gmra.mxu3 %vm810_vm4, %v3690_v47 }
  0xa6   : > { %v3700_v48 = vpop.f32.mrf.mxu2  ;;  %v3702_v50 = vpop.f32.mrf.mxu1 }
  0xa7   : > { %3001 = vmatmul.msk.bf16.gmra.mxu0 %vm810_vm4, %v3311_v1 }
  0xa9   : > { %2934 = vmatmul.msk.bf16.gmra.mxu1 %vm810_vm4, %v3690_v47 }
  0xaa   : > { %v3708_v12 = vpop.f32.mrf.mxu0 }
  0xab   : > { %v3713_v60 = vpop.f32.mrf.mxu3 }
  0xac   : > { %4585 = vst [vmem:[#allocation18_spill] sm:$0xff] %v3713_v60 }
  0xad   : > { %2966 = vmatmul.msk.bf16.gmra.mxu2 %vm810_vm4, %v3710_v15 }
  0xae   : > { %v3722_v59 = vpop.f32.mrf.mxu2 }
  0xaf   : > { %v3724_v24 = vpop.f32.mrf.mxu1 }
  0xb2   : > { %2986 = vmatmul.msk.bf16.gmra.mxu3 %vm810_vm4, %v3718_v0  ;;  %v3732_v63 = vpop.f32.mrf.mxu0 }
  0xb3   : > { %v3734_v26 = vpop.f32.mrf.mxu3 }
  0xb4   : > { %4586 = vst [vmem:[#allocation19_spill] sm:$0xff] %v3734_v26 }
  0xb7   : > { %3002 = vmatmul.msk.bf16.gmra.mxu0 %vm810_vm4, %v3385_v45  ;;  %v3738_v7 = vpop.f32.mrf.mxu1 }
  0xb9   : > { %2935 = vmatmul.msk.bf16.gmra.mxu1 %vm810_vm4, %v3718_v0 }
  0xba   : > { %v3744_v6 = vpop.f32.mrf.mxu2 }
  0xbd   : > { %v3747_v11 = vpop.f32.mrf.mxu0  ;;  %2967 = vmatmul.msk.bf16.gmra.mxu2 %vm810_vm4, %v3742_v28 }
  0xbf   : > { %v3756_v44 = vpop.f32.mrf.mxu3 }
  0xc0   : > { %4587 = vst [vmem:[#allocation20_spill] sm:$0xff] %v3756_v44  ;;  %v1251_v44 = vrot.slane %v1249_v30, 4 }
  0xc2   : > { %v3758_v55 = vpop.f32.mrf.mxu1  ;;  %2987 = vmatmul.msk.bf16.gmra.mxu3 %vm810_vm4, %v3752_v25  ;;  %v3766_v10 = vpop.f32.mrf.mxu2  ;;  %v1253_v4 = vsel %vm3599_vm7, %v1251_v44, %v1252_v34  ;;  %v1256_v44 = vrot.slane %v3358_v49, 5 }
  0xc5   : > { %v3770_v20 = vpop.f32.mrf.mxu0 }
  0xc7   : > { %3003 = vmatmul.msk.bf16.gmra.mxu0 %vm810_vm4, %v3473_v42  ;;  %v3772_v36 = vpop.f32.mrf.mxu3 }
  0xc8   : > { %4588 = vst [vmem:[#allocation21_spill] sm:$0xff] %v3772_v36  ;;  %v3173_v36 = vld [vmem:[%s3270_s6 + $0x60] sm:$0xf] }
  0xc9   : > { %2936 = vmatmul.msk.bf16.gmra.mxu1 %vm810_vm4, %v3752_v25 }
  0xca   : > { %v3779_v16 = vpop.f32.mrf.mxu1 }
  0xcd   : > { %2968 = vmatmul.msk.bf16.gmra.mxu2 %vm810_vm4, %v3776_v46  ;;  %v3783_v31 = vpop.f32.mrf.mxu2 }
  0xd1   : > { %v3790_v43 = vpop.f32.mrf.mxu0 }
  0xd2   : > { %v3792_v19 = vpop.f32.mrf.mxu3  ;;  %2988 = vmatmul.msk.bf16.gmra.mxu3 %vm810_vm4, %v3786_v23 }
  0xd3   : > { %4591 = vst [vmem:[#allocation24_spill] sm:$0xff] %v3792_v19  ;;  %v3821_v19 = vld [vmem:[%s3270_s6 + $0x60] sm:$0xff] }
  0xd4   : > { %4594 = vst [vmem:[#allocation27_spill] sm:$0xff] %v3821_v19 }
  0xd5   : > { %v3802_v13 = vpop.f32.mrf.mxu2 }
  0xd6   : > { %v3800_v14 = vpop.f32.mrf.mxu1 }
  0xd7   : > { %3004 = vmatmul.msk.bf16.gmra.mxu0 %vm810_vm4, %v3564_v54  ;;  %v2954_v54 = vrot.slane %v3173_v36, 9  ;;  %v1320_v36 = vunpack.c.l.b16 %v1253_v4 }
  0xd9   : > { %2937 = vmatmul.msk.bf16.gmra.mxu1 %vm810_vm4, %v3786_v23  ;;  %v3810_v57 = vpop.f32.mrf.mxu0  ;;  %v1250_v58 = vsel %vm3599_vm7, %v2954_v54, %v1249_v30 }
  0xda   : > { %v3813_v35 = vpop.f32.mrf.mxu3  ;;  %v1319_v23 = vunpack.c.l.b16 %v1250_v58  ;;  %v3854_v58 = vld [vmem:[%s3270_s6 + $0x6c] sm:$0xff] }
  0xdb   : > { %4593 = vst [vmem:[#allocation26_spill] sm:$0xff] %v3813_v35 }
  0xdc   : > { %v3843_v54 = vpack.c.b16 %v1320_v36, %v1319_v23  ;;  %v1258_v23 = vrot.slane %v1256_v44, 4 }
  0xdd   : > { %2969 = vmatmul.msk.bf16.gmra.mxu2 %vm810_vm4, %v3808_v2 }
  0xde   : > { %v3817_v32 = vpop.f32.mrf.mxu1  ;;  %4596 = vst [vmem:[#allocation29_spill] sm:$0xff] %v3843_v54 }
  0xe0   : > { %v3824_v9 = vpop.f32.mrf.mxu2 }
  0xe2   : > { %2989 = vmatmul.msk.bf16.gmra.mxu3 %vm810_vm4, %v3821_v19 }
  0xe4   : > { %v3832_v35 = vpop.f32.mrf.mxu0 }
  0xe5   : > { %v3834_v37 = vpop.f32.mrf.mxu3 }
  0xe6   : > { %4595 = vst [vmem:[#allocation28_spill] sm:$0xff] %v3834_v37  ;;  %v1092_v2 = vpop.f32.mrf.mxu1  ;;  %v2955_v37 = vrot.slane %v3349_v40, 9 }
  0xe7   : > { %v1093_v26 = vadd.f32 %v1092_v2, %v3708_v12  ;;  %3005 = vmatmul.msk.bf16.gmra.mxu0 %vm810_vm4, %v3329_v22  ;;  %v1259_v2 = vrot.slane %v3365_v53, 5 }
  0xe8   : > { %v3839_v46 = vpop.f32.mrf.mxu2  ;;  %v1257_v49 = vsel %vm3599_vm7, %v2955_v37, %v1256_v44 }
  0xe9   : > { %2938 = vmatmul.msk.bf16.gmra.mxu1 %vm810_vm4, %v3821_v19  ;;  %v1321_v42 = vunpack.c.l.b16 %v1257_v49 }
  0xec   : > { %v3846_v30 = vpop.f32.mrf.mxu0 }
  0xed   : > { %v3848_v34 = vpop.f32.mrf.mxu3  ;;  %2970 = vmatmul.msk.bf16.gmra.mxu2 %vm810_vm4, %v3843_v54 }
  0xee   : > { %4597 = vst [vmem:[#allocation30_spill] sm:$0xff] %v3848_v34  ;;  %v1094_v12 = vpop.f32.mrf.mxu1  ;;  %v1260_v34 = vsel %vm3599_vm7, %v1258_v23, %v1259_v2  ;;  %v1263_v2 = vrot.slane %v3434_v51, 5 }
  0xef   : > { %v1095_v4 = vadd.f32 %v1094_v12, %v3732_v63  ;;  %v1322_v60 = vunpack.c.l.b16 %v1260_v34  ;;  %v1266_v34 = vrot.slane %v3437_v52, 5 }
  0xf0   : > { %v1411_v36 = vpop.f32.mrf.mxu2 }
  0xf1   : > { %v1491_v22 = vadd.f32 %v1411_v36, %v1093_v26  ;;  %v3871_v12 = vpack.c.b16 %v1322_v60, %v1321_v42  ;;  %v3878_v36 = vld [vmem:[%s3270_s6 + $0x78] sm:$0xff] }
  0xf2   : > { %2990 = vmatmul.msk.bf16.gmra.mxu3 %vm810_vm4, %v3854_v58 }
  0xf4   : > { %v1701_v54 = vpop.f32.mrf.mxu0 }
  0xf5   : > { %v1547_v53 = vpop.f32.mrf.mxu3 }
  0xf6   : > { %v1097_v19 = vpop.f32.mrf.mxu1  ;;  %v1627_v63 = vadd.f32 %v1547_v53, %v1491_v22 }
  0xf7   : > { %v1098_v40 = vadd.f32 %v1097_v19, %v3747_v11  ;;  %3006 = vmatmul.msk.bf16.gmra.mxu0 %vm810_vm4, %v3407_v3 }
  0xf8   : > { %v1413_v26 = vpop.f32.mrf.mxu2  ;;  %v3869_v37 = vadd.f32 %v1701_v54, %v1627_v63  ;;  %v2956_v54 = vrot.slane %v3426_v29, 9 }
  0xf9   : > { %2939 = vmatmul.msk.bf16.gmra.mxu1 %vm810_vm4, %v3854_v58  ;;  %v1492_v44 = vadd.f32 %v1413_v26, %v1095_v4  ;;  %v1265_v4 = vrot.slane %v1263_v2, 4 }
  0xfa   : > { %v1264_v52 = vsel %vm3599_vm7, %v2956_v54, %v1263_v2 }
  0xfb   : > { %v1267_v53 = vsel %vm3599_vm7, %v1265_v4, %v1266_v34 }
  0xfc   : > { %v1703_v23 = vpop.f32.mrf.mxu0 }
  0xfd   : > { %v1549_v22 = vpop.f32.mrf.mxu3  ;;  %2971 = vmatmul.msk.bf16.gmra.mxu2 %vm810_vm4, %v3871_v12 }
  0xfe   : > { %v1099_v11 = vpop.f32.mrf.mxu1  ;;  %v1628_v19 = vadd.f32 %v1549_v22, %v1492_v44  ;;  %v1324_v22 = vunpack.c.l.b16 %v1267_v53 }
  0xff   : > { %v1100_v49 = vadd.f32 %v1099_v11, %v3770_v20  ;;  %v1323_v20 = vunpack.c.l.b16 %v1264_v52 }
 0x100   : > { %v1416_v42 = vpop.f32.mrf.mxu2  ;;  %v3882_v60 = vadd.f32 %v1703_v23, %v1628_v19  ;;  %v4599_v19 = vld [vmem:[#allocation11_spill] sm:$0xff] }
 0x101   : > { %v1493_v51 = vadd.f32 %v1416_v42, %v1098_v40  ;;  %v3897_v34 = vpack.c.b16 %v1324_v22, %v1323_v20  ;;  %v1270_v54 = vrot.slane %v4599_v19, 5  ;;  %v4600_v42 = vld [vmem:[#allocation12_spill] sm:$0xff] }
 0x102   : > { %2991 = vmatmul.msk.bf16.gmra.mxu3 %vm810_vm4, %v3878_v36  ;;  %v1273_v52 = vrot.slane %v4600_v42, 5 }
 0x103   : > { %4598 = vst [vmem:[#allocation31_spill] sm:$0xff] %v3897_v34 }
 0x104   : > { %v1706_v63 = vpop.f32.mrf.mxu0 }
 0x105   : > { %v1552_v26 = vpop.f32.mrf.mxu3 }
 0x106   : > { %v1102_v44 = vpop.f32.mrf.mxu1  ;;  %v1629_v29 = vadd.f32 %v1552_v26, %v1493_v51  ;;  %v3904_v26 = vld [vmem:[%s3270_s6 + $0x84] sm:$0xff] }
 0x107   : > { %v1103_v23 = vadd.f32 %v1102_v44, %v3790_v43  ;;  %3007 = vmatmul.msk.bf16.gmra.mxu0 %vm810_vm4, %v3498_v33 }
 0x108   : > { %v1418_v40 = vpop.f32.mrf.mxu2  ;;  %v3895_v2 = vadd.f32 %v1706_v63, %v1629_v29  ;;  %v4601_v63 = vld [vmem:[#allocation9_spill] sm:$0xff] }
 0x109   : > { %2940 = vmatmul.msk.bf16.gmra.mxu1 %vm810_vm4, %v3878_v36  ;;  %v1494_v11 = vadd.f32 %v1418_v40, %v1100_v49  ;;  %v2957_v29 = vrot.slane %v4601_v63, 9  ;;  %v1272_v49 = vrot.slane %v1270_v54, 4 }
 0x10b   : > { %v1271_v19 = vsel %vm3599_vm7, %v2957_v29, %v1270_v54  ;;  %v3174_v29 = vld [vmem:[%s3270_s6 + $0x94] sm:$0xf] }
 0x10c   : > { %v1708_v4 = vpop.f32.mrf.mxu0 }
 0x10d   : > { %v1554_v51 = vpop.f32.mrf.mxu3  ;;  %2972 = vmatmul.msk.bf16.gmra.mxu2 %vm810_vm4, %v3897_v34 }
 0x10e   : > { %v1104_v43 = vpop.f32.mrf.mxu1  ;;  %v1630_v53 = vadd.f32 %v1554_v51, %v1494_v11  ;;  %v1274_v11 = vsel %vm3599_vm7, %v1272_v49, %v1273_v52  ;;  %v1277_v49 = vrot.slane %v3174_v29, 5 }
 0x10f   : > { %v1105_v44 = vadd.f32 %v1104_v43, %v3810_v57  ;;  %v1325_v43 = vunpack.c.l.b16 %v1271_v19  ;;  %v1326_v63 = vunpack.c.l.b16 %v1274_v11 }
 0x110   : > { %v1421_v20 = vpop.f32.mrf.mxu2  ;;  %v3908_v22 = vadd.f32 %v1708_v4, %v1630_v53 }
 0x111   : > { %v1495_v40 = vadd.f32 %v1421_v20, %v1103_v23  ;;  %v3923_v53 = vpack.c.b16 %v1326_v63, %v1325_v43 }
 0x112   : > { %4602 = vst [vmem:[#allocation11_spill] sm:$0xff] %v3908_v22  ;;  %2992 = vmatmul.msk.bf16.gmra.mxu3 %vm810_vm4, %v3904_v26 }
 0x113   : > { %4604 = vst [vmem:[#allocation9_spill] sm:$0xff] %v3923_v53 }
 0x114   : > { %v1711_v42 = vpop.f32.mrf.mxu0 }
 0x115   : > { %v1557_v57 = vpop.f32.mrf.mxu3 }
 0x116   : > { %v1107_v51 = vpop.f32.mrf.mxu1  ;;  %v1631_v34 = vadd.f32 %v1557_v57, %v1495_v40  ;;  %v3175_v40 = vld [vmem:[%s3270_s6 + $0x98] sm:$0x1] }
 0x117   : > { %v1108_v4 = vadd.f32 %v1107_v51, %v3832_v35  ;;  %3008 = vmatmul.msk.bf16.gmra.mxu0 %vm810_vm4, %v3585_v41  ;;  %v1280_v19 = vrot.slane %v3175_v40, 5  ;;  %v3930_v51 = vld [vmem:[%s3270_s6 + $0x90] sm:$0xff] }
 0x118   : > { %v1423_v23 = vpop.f32.mrf.mxu2  ;;  %v3921_v54 = vadd.f32 %v1711_v42, %v1631_v34  ;;  %4605 = vst [vmem:[#allocation32_spill] sm:$0xff] %v3930_v51  ;;  %v3176_v34 = vld [vmem:[%s3270_s6 + $0x90] sm:$0xf] }
 0x119   : > { %2941 = vmatmul.msk.bf16.gmra.mxu1 %vm810_vm4, %v3904_v26  ;;  %v1496_v52 = vadd.f32 %v1423_v23, %v1105_v44  ;;  %v2958_v42 = vrot.slane %v3176_v34, 9  ;;  %v1279_v44 = vrot.slane %v1277_v49, 4 }
 0x11a   : > { %4603 = vst [vmem:[#allocation12_spill] sm:$0xff] %v3921_v54  ;;  %v3179_v54 = vld [vmem:[%s3270_s6 + $0x9c] sm:$0xf] }
 0x11b   : > { %v1278_v29 = vsel %vm3599_vm7, %v2958_v42, %v1277_v49  ;;  %v3177_v42 = vld [vmem:[%s3270_s6 + $0xa0] sm:$0xf] }
 0x11c   : > { %v1713_v20 = vpop.f32.mrf.mxu0 }
 0x11d   : > { %v1559_v35 = vpop.f32.mrf.mxu3  ;;  %2973 = vmatmul.msk.bf16.gmra.mxu2 %vm810_vm4, %v3923_v53 }
 0x11e   : > { %v1109_v11 = vpop.f32.mrf.mxu1  ;;  %v1632_v57 = vadd.f32 %v1559_v35, %v1496_v52  ;;  %v1281_v52 = vsel %vm3599_vm7, %v1279_v44, %v1280_v19  ;;  %v1284_v44 = vrot.slane %v3177_v42, 5 }
 0x11f   : > { %v1110_v41 = vadd.f32 %v1109_v11, %v3846_v30  ;;  %v1327_v11 = vunpack.c.l.b16 %v1278_v29  ;;  %v1328_v34 = vunpack.c.l.b16 %v1281_v52  ;;  %v3178_v52 = vld [vmem:[%s3270_s6 + $0xa4] sm:$0x1] }
 0x120   : > { %v1426_v43 = vpop.f32.mrf.mxu2  ;;  %v3934_v63 = vadd.f32 %v1713_v20, %v1632_v57  ;;  %v4607_v20 = vld [vmem:[#allocation3_spill] sm:$0xff] }
 0x121   : > { %v1497_v23 = vadd.f32 %v1426_v43, %v1108_v4  ;;  %v3948_v19 = vpack.c.b16 %v1328_v34, %v1327_v11 }
 0x122   : > { %4606 = vst [vmem:[#allocation33_spill] sm:$0xff] %v3934_v63  ;;  %2993 = vmatmul.msk.bf16.gmra.mxu3 %vm810_vm4, %v3930_v51  ;;  %v3955_v63 = vld [vmem:[%s3270_s6 + $0x9c] sm:$0xff] }
 0x123   : > { %4609 = vst [vmem:[#allocation35_spill] sm:$0xff] %v3948_v19 }
 0x124   : > { %v1716_v40 = vpop.f32.mrf.mxu0  ;;  %4610 = vst [vmem:[#allocation36_spill] sm:$0xff] %v3955_v63 }
 0x125   : > { %v1562_v35 = vpop.f32.mrf.mxu3 }
 0x126   : > { %v1112_v30 = vpop.f32.mrf.mxu1  ;;  %v1633_v53 = vadd.f32 %v1562_v35, %v1497_v23  ;;  %v1287_v35 = vrot.slane %v3178_v52, 5 }
 0x127   : > { %3009 = vmatmul.msk.bf16.gmra.mxu0 %vm810_vm4, %v4607_v20 }
 0x128   : > { %v1428_v4 = vpop.f32.mrf.mxu2  ;;  %v3946_v49 = vadd.f32 %v1716_v40, %v1633_v53  ;;  %v1286_v53 = vrot.slane %v1284_v44, 4 }
 0x129   : > { %2942 = vmatmul.msk.bf16.gmra.mxu1 %vm810_vm4, %v3930_v51  ;;  %v1498_v57 = vadd.f32 %v1428_v4, %v1110_v41  ;;  %v2959_v51 = vrot.slane %v3179_v54, 9  ;;  %v1113_v41 = vadd.f32 %v1112_v30, %v3685_v5  ;;  %v4612_v30 = vld [vmem:[#allocation4_spill] sm:$0xff] }
 0x12a   : > { %4608 = vst [vmem:[#allocation34_spill] sm:$0xff] %v3946_v49 }
 0x12b   : > { %v1285_v4 = vsel %vm3599_vm7, %v2959_v51, %v1284_v44 }
 0x12c   : > { %v1718_v43 = vpop.f32.mrf.mxu0  ;;  %v1329_v54 = vunpack.c.l.b16 %v1285_v4 }
 0x12d   : > { %v1564_v29 = vpop.f32.mrf.mxu3  ;;  %2974 = vmatmul.msk.bf16.gmra.mxu2 %vm810_vm4, %v3948_v19 }
 0x12e   : > { %v1114_v23 = vpop.f32.mrf.mxu1  ;;  %v1634_v20 = vadd.f32 %v1564_v29, %v1498_v57  ;;  %v1288_v57 = vsel %vm3599_vm7, %v1286_v53, %v1287_v35  ;;  %v4615_v53 = vld [vmem:[#allocation6_spill] sm:$0xff] }
 0x12f   : > { %v1330_v19 = vunpack.c.l.b16 %v1288_v57  ;;  %v4616_v57 = vld [vmem:[#allocation7_spill] sm:$0xff] }
 0x130   : > { %v1431_v40 = vpop.f32.mrf.mxu2  ;;  %v3959_v11 = vadd.f32 %v1718_v43, %v1634_v20  ;;  %v1115_v20 = vadd.f32 %v1114_v23, %v3702_v50  ;;  %v3981_v23 = vld [vmem:[%s3270_s6 + $0xa8] sm:$0xff] }
 0x131   : > { %v1499_v34 = vadd.f32 %v1431_v40, %v1113_v41  ;;  %v3974_v35 = vpack.c.b16 %v1330_v19, %v1329_v54  ;;  %v1291_v41 = vrot.slane %v4615_v53, 5  ;;  %4617 = vst [vmem:[#allocation6_spill] sm:$0xff] %v3981_v23 }
 0x132   : > { %4611 = vst [vmem:[#allocation37_spill] sm:$0xff] %v3959_v11  ;;  %2994 = vmatmul.msk.bf16.gmra.mxu3 %vm810_vm4, %v3955_v63 }
 0x133   : > { %4614 = vst [vmem:[#allocation39_spill] sm:$0xff] %v3974_v35 }
 0x134   : > { %v1721_v42 = vpop.f32.mrf.mxu0 }
 0x135   : > { %v1567_v29 = vpop.f32.mrf.mxu3 }
 0x136   : > { %v1117_v52 = vpop.f32.mrf.mxu1  ;;  %v1635_v5 = vadd.f32 %v1567_v29, %v1499_v34  ;;  %v1294_v29 = vrot.slane %v4616_v57, 5 }
 0x137   : > { %3010 = vmatmul.msk.bf16.gmra.mxu0 %vm810_vm4, %v4612_v30  ;;  %v4618_v30 = vld [vmem:[#allocation5_spill] sm:$0xff] }
 0x138   : > { %v1433_v43 = vpop.f32.mrf.mxu2  ;;  %v3972_v51 = vadd.f32 %v1721_v42, %v1635_v5  ;;  %v2960_v11 = vrot.slane %v4618_v30, 9  ;;  %v1293_v42 = vrot.slane %v1291_v41, 4  ;;  %v1118_v5 = vadd.f32 %v1117_v52, %v3724_v24 }
 0x139   : > { %2943 = vmatmul.msk.bf16.gmra.mxu1 %vm810_vm4, %v3955_v63  ;;  %v1500_v44 = vadd.f32 %v1433_v43, %v1115_v20 }
 0x13a   : > { %4613 = vst [vmem:[#allocation38_spill] sm:$0xff] %v3972_v51  ;;  %v1292_v43 = vsel %vm3599_vm7, %v2960_v11, %v1291_v41  ;;  %v3999_v11 = vld [vmem:[%s3270_s6 + $0xc0] sm:$0xf] }
 0x13b   : > { %v1331_v57 = vunpack.c.l.b16 %v1292_v43  ;;  %4621 = vst [vmem:[#allocation5_spill] sm:$0xff] %v3999_v11  ;;  %v1660_v43 = vshrl.u32 %v3999_v11, 16 }
 0x13c   : > { %v1723_v40 = vpop.f32.mrf.mxu0 }
 0x13d   : > { %v1569_v4 = vpop.f32.mrf.mxu3  ;;  %2975 = vmatmul.msk.bf16.gmra.mxu2 %vm810_vm4, %v3974_v35  ;;  %v4620_v35 = vld [vmem:[#allocation10_spill] sm:$0xff] }
 0x13e   : > { %v1119_v34 = vpop.f32.mrf.mxu1  ;;  %v1636_v50 = vadd.f32 %v1569_v4, %v1500_v44  ;;  %v1295_v44 = vsel %vm3599_vm7, %v1293_v42, %v1294_v29 }
 0x13f   : > { %v1332_v24 = vunpack.c.l.b16 %v1295_v44 }
 0x140   : > { %v1436_v19 = vpop.f32.mrf.mxu2  ;;  %v3985_v54 = vadd.f32 %v1723_v40, %v1636_v50  ;;  %v1120_v40 = vadd.f32 %v1119_v34, %v3738_v7  ;;  %v1663_v7 = vshll.u32 %v3999_v11, 16 }
 0x141   : > { %v1501_v20 = vadd.f32 %v1436_v19, %v1118_v5  ;;  %v4003_v42 = vpack.c.b16 %v1332_v24, %v1331_v57  ;;  %v4006_v5 = vld [vmem:[%s3270_s6 + $0xc4] sm:$0xf]  ;;  %v4626_v57 = vld [vmem:[#allocation15_spill] sm:$0xff] }
 0x142   : > { %4619 = vst [vmem:[#allocation7_spill] sm:$0xff] %v3985_v54  ;;  %2995 = vmatmul.msk.bf16.gmra.mxu3 %vm810_vm4, %v3981_v23  ;;  %v4625_v19 = vld [vmem:[#allocation14_spill] sm:$0xff]  ;;  %v1669_v34 = vshll.u32 %v4006_v5, 16  ;;  %v1301_v24 = vrot.slane %v4626_v57, 5  ;;  %v1662_v54 = vrot.slane %v1660_v43, 4  ;;  %v1665_v51 = vrot.slane %v1663_v7, 5 }
 0x143   : > { %4623 = vst [vmem:[#allocation41_spill] sm:$0xff] %v4003_v42 }
 0x144   : > { %v1726_v53 = vpop.f32.mrf.mxu0  ;;  %4624 = vst [vmem:[#allocation42_spill] sm:$0xff] %v4006_v5 }
 0x145   : > { %v1572_v30 = vpop.f32.mrf.mxu3 }
 0x146   : > { %v1122_v4 = vpop.f32.mrf.mxu1  ;;  %v1637_v52 = vadd.f32 %v1572_v30, %v1501_v20  ;;  %v1298_v20 = vrot.slane %v4625_v19, 5  ;;  %v1673_v30 = vshrl.u32 %v4006_v5, 16  ;;  %v1671_v5 = vrot.slane %v1669_v34, 5 }
 0x147   : > { %3011 = vmatmul.msk.bf16.gmra.mxu0 %vm810_vm4, %v4620_v35  ;;  %v1123_v11 = vadd.f32 %v1122_v4, %v3758_v55  ;;  %v1666_v4 = vor.u32 %v1665_v51, %v1662_v54 }
 0x148   : > { %v1438_v50 = vpop.f32.mrf.mxu2  ;;  %v4001_v41 = vadd.f32 %v1726_v53, %v1637_v52  ;;  %v1675_v63 = vrot.slane %v1673_v30, 4 }
 0x149   : > { %2944 = vmatmul.msk.bf16.gmra.mxu1 %vm810_vm4, %v3981_v23  ;;  %v1502_v29 = vadd.f32 %v1438_v50, %v1120_v40  ;;  %v4017_v40 = vld [vmem:[%s3270_s6 + $0xb4] sm:$0xff] }
 0x14a   : > { %4622 = vst [vmem:[#allocation40_spill] sm:$0xff] %v4001_v41  ;;  %v4627_v50 = vld [vmem:[#allocation13_spill] sm:$0xff]  ;;  %v1300_v41 = vrot.slane %v1298_v20, 4  ;;  %v1676_v43 = vor.u32 %v1675_v63, %v1671_v5 }
 0x14b   : > { %v2961_v19 = vrot.slane %v4627_v50, 9 }
 0x14c   : > { %v1728_v44 = vpop.f32.mrf.mxu0  ;;  %v1677_v51 = vrot.slane %v1676_v43, 4 }
 0x14d   : > { %v1574_v35 = vpop.f32.mrf.mxu3  ;;  %2976 = vmatmul.msk.bf16.gmra.mxu2 %vm810_vm4, %v4003_v42  ;;  %v4024_v42 = vld [vmem:[%s3270_s6 + $0xc8] sm:$0x1] }
 0x14e   : > { %v1124_v53 = vpop.f32.mrf.mxu1  ;;  %v1638_v52 = vadd.f32 %v1574_v35, %v1502_v29  ;;  %v1299_v35 = vsel %vm3599_vm7, %v2961_v19, %v1298_v20  ;;  %v1302_v29 = vsel %vm3599_vm7, %v1300_v41, %v1301_v24  ;;  %v1679_v7 = vshll.u32 %v4024_v42, 16 }
 0x14f   : > { %v1333_v30 = vunpack.c.l.b16 %v1299_v35  ;;  %v1125_v57 = vadd.f32 %v1124_v53, %v3779_v16  ;;  %v1667_v41 = vrot.slane %v1666_v4, 4 }
 0x150   : > { %v1441_v23 = vpop.f32.mrf.mxu2  ;;  %v4021_v49 = vadd.f32 %v1728_v44, %v1638_v52  ;;  %v1681_v63 = vrot.slane %v1679_v7, 5 }
 0x151   : > { %v1503_v22 = vadd.f32 %v1441_v23, %v1123_v11  ;;  %v1334_v23 = vunpack.c.l.b16 %v1302_v29  ;;  %v4049_v29 = vld [vmem:[%s3270_s6 + $0xc0] sm:$0xff] }
 0x152   : > { %2996 = vmatmul.msk.bf16.gmra.mxu3 %vm810_vm4, %v4017_v40  ;;  %v1682_v16 = vsel %vm3299_vm3, %v1677_v51, %v1681_v63 }
 0x153   : > { %v4040_v52 = vpack.c.b16 %v1334_v23, %v1333_v30  ;;  %v1684_v43 = vunpack.c.l.b16 %v1682_v16 }
 0x154   : > { %v1731_v55 = vpop.f32.mrf.mxu0 }
 0x155   : > { %v1577_v34 = vpop.f32.mrf.mxu3 }
 0x156   : > { %v1127_v44 = vpop.f32.mrf.mxu1  ;;  %v1639_v11 = vadd.f32 %v1577_v34, %v1503_v22  ;;  %v1672_v22 = vsel %vm3299_vm3, %v1667_v41, %v1671_v5 }
 0x157   : > { %3012 = vmatmul.msk.bf16.gmra.mxu0 %vm810_vm4, %v3606_v17  ;;  %v1683_v4 = vunpack.c.l.b16 %v1672_v22 }
 0x158   : > { %v1443_v20 = vpop.f32.mrf.mxu2  ;;  %v4038_v54 = vadd.f32 %v1731_v55, %v1639_v11  ;;  %v1128_v55 = vadd.f32 %v1127_v44, %v3800_v14 }
 0x159   : > { %2945 = vmatmul.msk.bf16.gmra.mxu1 %vm810_vm4, %v4017_v40  ;;  %v1504_v24 = vadd.f32 %v1443_v20, %v1125_v57  ;;  %v4056_v5 = vpack.c.b16 %v1684_v43, %v1683_v4 }
 0x15c   : > { %v1733_v50 = vpop.f32.mrf.mxu0 }
 0x15d   : > { %v1579_v53 = vpop.f32.mrf.mxu3  ;;  %2977 = vmatmul.msk.bf16.gmra.mxu2 %vm810_vm4, %v4040_v52 }
 0x15e   : > { %v1129_v19 = vpop.f32.mrf.mxu1  ;;  %v1640_v35 = vadd.f32 %v1579_v53, %v1504_v24 }
 0x15f   : > { %v1130_v14 = vadd.f32 %v1129_v19, %v3817_v32 }
 0x160   : > { %v1446_v7 = vpop.f32.mrf.mxu2  ;;  %v4052_v34 = vadd.f32 %v1733_v50, %v1640_v35 }
 0x161   : > { %v1505_v30 = vadd.f32 %v1446_v7, %v1128_v55 }
 0x162   : > { %2997 = vmatmul.msk.bf16.gmra.mxu3 %vm810_vm4, %v4049_v29 }
 0x164   : > { %v1736_v23 = vpop.f32.mrf.mxu0 }
 0x165   : > { %v1582_v11 = vpop.f32.mrf.mxu3 }
 0x166   : > { %v1132_v57 = vpop.f32.mrf.mxu1  ;;  %v1641_v20 = vadd.f32 %v1582_v11, %v1505_v30 }
 0x167   : > { %3013 = vmatmul.msk.bf16.gmra.mxu0 %vm810_vm4, %v4056_v5  ;;  %v1133_v16 = vadd.f32 %v1132_v57, %v3700_v48 }
 0x168   : > { %v1448_v44 = vpop.f32.mrf.mxu2  ;;  %v4063_v41 = vadd.f32 %v1736_v23, %v1641_v20 }
 0x169   : > { %3015 = vmatmul.msk.bf16.vlgmr.msra.gmra.mxu1 %vm810_vm4, %v3636_v21  ;;  %v1506_v51 = vadd.f32 %v1448_v44, %v1130_v14 }
 0x16c   : > { %v1738_v63 = vpop.f32.mrf.mxu0 }
 0x16d   : > { %v1584_v24 = vpop.f32.mrf.mxu3  ;;  %3035 = vmatmul.msk.bf16.vlgmr.msra.gmra.mxu2 %vm810_vm4, %v3648_v8 }
 0x16e   : > { %v1134_v50 = vpop.f32.mrf.mxu1  ;;  %v1642_v22 = vadd.f32 %v1584_v24, %v1506_v51 }
 0x16f   : > { %v1135_v8 = vadd.f32 %v1134_v50, %v3722_v59 }
 0x170   : > { %v1451_v53 = vpop.f32.mrf.mxu2  ;;  %v4068_v35 = vadd.f32 %v1738_v63, %v1642_v22 }
 0x171   : > { %v1507_v32 = vadd.f32 %v1451_v53, %v1133_v16 }
 0x172   : > { %3051 = vmatmul.msk.bf16.vlgmr.msra.gmra.mxu3 %vm810_vm4, %v3543_v56 }
 0x174   : > { %v1741_v21 = vpop.f32.mrf.mxu0 }
 0x175   : > { %v1587_v19 = vpop.f32.mrf.mxu3 }
 0x176   : > { %v1137_v55 = vpop.f32.mrf.mxu1  ;;  %v1643_v4 = vadd.f32 %v1587_v19, %v1507_v32 }
 0x177   : > { %3068 = vmatmul.msk.bf16.vlgmr.msra.gmra.mxu0 %vm810_vm4, %v3662_v38  ;;  %v1138_v57 = vadd.f32 %v1137_v55, %v3744_v6 }
 0x178   : > { %v1453_v43 = vpop.f32.mrf.mxu2  ;;  %v4077_v48 = vadd.f32 %v1741_v21, %v1643_v4 }
 0x179   : > { %3016 = vmatmul.msk.bf16.gmra.mxu1 %vm810_vm4, %v3662_v38  ;;  %v1508_v7 = vadd.f32 %v1453_v43, %v1135_v8 }
 0x17c   : > { %v1743_v30 = vpop.f32.mrf.mxu0 }
 0x17d   : > { %v1589_v23 = vpop.f32.mrf.mxu3  ;;  %3036 = vmatmul.msk.bf16.gmra.mxu2 %vm810_vm4, %v3668_v62 }
 0x17e   : > { %v1139_v56 = vpop.f32.mrf.mxu1  ;;  %v1644_v11 = vadd.f32 %v1589_v23, %v1508_v7 }
 0x17f   : > { %v1140_v62 = vadd.f32 %v1139_v56, %v3766_v10 }
 0x180   : > { %v1456_v20 = vpop.f32.mrf.mxu2  ;;  %v4082_v14 = vadd.f32 %v1743_v30, %v1644_v11 }
 0x181   : > { %v1509_v59 = vadd.f32 %v1456_v20, %v1138_v57 }
 0x182   : > { %3052 = vmatmul.msk.bf16.gmra.mxu3 %vm810_vm4, %v3626_v61 }
 0x184   : > { %v1746_v38 = vpop.f32.mrf.mxu0 }
 0x185   : > { %v1592_v44 = vpop.f32.mrf.mxu3 }
 0x186   : > { %v1142_v51 = vpop.f32.mrf.mxu1  ;;  %v1645_v63 = vadd.f32 %v1592_v44, %v1509_v59 }
 0x187   : > { %3069 = vmatmul.msk.bf16.gmra.mxu0 %vm810_vm4, %v3682_v27  ;;  %v1143_v32 = vadd.f32 %v1142_v51, %v3783_v31 }
 0x188   : > { %v1458_v24 = vpop.f32.mrf.mxu2  ;;  %v4091_v6 = vadd.f32 %v1746_v38, %v1645_v63 }
 0x189   : > { %3017 = vmatmul.msk.bf16.gmra.mxu1 %vm810_vm4, %v3682_v27  ;;  %v1510_v50 = vadd.f32 %v1458_v24, %v1140_v62 }
 0x18c   : > { %v1748_v22 = vpop.f32.mrf.mxu0 }
 0x18d   : > { %v1594_v16 = vpop.f32.mrf.mxu3  ;;  %3037 = vmatmul.msk.bf16.gmra.mxu2 %vm810_vm4, %v3690_v47 }
 0x18e   : > { %v1144_v61 = vpop.f32.mrf.mxu1  ;;  %v1646_v53 = vadd.f32 %v1594_v16, %v1510_v50 }
 0x18f   : > { %v1145_v47 = vadd.f32 %v1144_v61, %v3802_v13 }
 0x190   : > { %v1461_v21 = vpop.f32.mrf.mxu2  ;;  %v4096_v19 = vadd.f32 %v1748_v22, %v1646_v53  ;;  %v4628_v22 = vld [vmem:[#allocation18_spill] sm:$0xff] }
 0x191   : > { %v1511_v10 = vadd.f32 %v1461_v21, %v1143_v32  ;;  %v4629_v32 = vld [vmem:[#allocation8_spill] sm:$0xff] }
 0x192   : > { %3053 = vmatmul.msk.bf16.gmra.mxu3 %vm810_vm4, %v3311_v1 }
 0x194   : > { %v1751_v27 = vpop.f32.mrf.mxu0 }
 0x195   : > { %v1597_v55 = vpop.f32.mrf.mxu3 }
 0x196   : > { %v1147_v4 = vpop.f32.mrf.mxu1  ;;  %v1647_v8 = vadd.f32 %v1597_v55, %v1511_v10  ;;  %v4630_v55 = vld [vmem:[#allocation22_spill] sm:$0xff] }
 0x197   : > { %3070 = vmatmul.msk.bf16.gmra.mxu0 %vm810_vm4, %v3710_v15  ;;  %v1148_v11 = vadd.f32 %v1147_v4, %v3824_v9  ;;  %v4631_v4 = vld [vmem:[#allocation19_spill] sm:$0xff] }
 0x198   : > { %v1463_v43 = vpop.f32.mrf.mxu2  ;;  %v4105_v31 = vadd.f32 %v1751_v27, %v1647_v8 }
 0x199   : > { %3018 = vmatmul.msk.bf16.gmra.mxu1 %vm810_vm4, %v3710_v15  ;;  %v1512_v7 = vadd.f32 %v1463_v43, %v1145_v47 }
 0x19c   : > { %v1753_v30 = vpop.f32.mrf.mxu0 }
 0x19d   : > { %v1599_v23 = vpop.f32.mrf.mxu3  ;;  %3038 = vmatmul.msk.bf16.gmra.mxu2 %vm810_vm4, %v3718_v0 }
 0x19e   : > { %v1149_v1 = vpop.f32.mrf.mxu1  ;;  %v1648_v56 = vadd.f32 %v1599_v23, %v1512_v7  ;;  %v4632_v23 = vld [vmem:[#allocation23_spill] sm:$0xff] }
 0x19f   : > { %v1150_v0 = vadd.f32 %v1149_v1, %v3839_v46 }
 0x1a0   : > { %v1466_v57 = vpop.f32.mrf.mxu2  ;;  %v4110_v20 = vadd.f32 %v1753_v30, %v1648_v56 }
 0x1a1   : > { %v1513_v13 = vadd.f32 %v1466_v57, %v1148_v11  ;;  %v4633_v11 = vld [vmem:[#allocation20_spill] sm:$0xff] }
 0x1a2   : > { %3054 = vmatmul.msk.bf16.gmra.mxu3 %vm810_vm4, %v3385_v45 }
 0x1a4   : > { %v1756_v15 = vpop.f32.mrf.mxu0 }
 0x1a5   : > { %v1602_v59 = vpop.f32.mrf.mxu3 }
 0x1a6   : > { %v1152_v38 = vpop.f32.mrf.mxu1  ;;  %v1649_v44 = vadd.f32 %v1602_v59, %v1513_v13 }
 0x1a7   : > { %3071 = vmatmul.msk.bf16.gmra.mxu0 %vm810_vm4, %v3742_v28  ;;  %v1153_v16 = vadd.f32 %v1152_v38, %v4628_v22  ;;  %v4634_v38 = vld [vmem:[#allocation16_spill] sm:$0xff] }
 0x1a8   : > { %v1468_v51 = vpop.f32.mrf.mxu2  ;;  %v4119_v9 = vadd.f32 %v1756_v15, %v1649_v44 }
 0x1a9   : > { %3019 = vmatmul.msk.bf16.gmra.mxu1 %vm810_vm4, %v3742_v28  ;;  %v1514_v63 = vadd.f32 %v1468_v51, %v1150_v0 }
 0x1ac   : > { %v1758_v62 = vpop.f32.mrf.mxu0 }
 0x1ad   : > { %v1604_v24 = vpop.f32.mrf.mxu3  ;;  %3039 = vmatmul.msk.bf16.gmra.mxu2 %vm810_vm4, %v3752_v25 }
 0x1ae   : > { %v1154_v45 = vpop.f32.mrf.mxu1  ;;  %v1650_v50 = vadd.f32 %v1604_v24, %v1514_v63  ;;  %v4636_v24 = vld [vmem:[#allocation21_spill] sm:$0xff] }
 0x1af   : > { %v1155_v25 = vadd.f32 %v1154_v45, %v4631_v4 }
 0x1b0   : > { %v1471_v61 = vpop.f32.mrf.mxu2  ;;  %v4124_v53 = vadd.f32 %v1758_v62, %v1650_v50  ;;  %v4635_v62 = vld [vmem:[#allocation25_spill] sm:$0xff] }
 0x1b1   : > { %v1515_v46 = vadd.f32 %v1471_v61, %v1153_v16 }
 0x1b2   : > { %3055 = vmatmul.msk.bf16.gmra.mxu3 %vm810_vm4, %v4629_v32  ;;  %v4637_v32 = vld [vmem:[#allocation27_spill] sm:$0xff] }
 0x1b4   : > { %v1761_v28 = vpop.f32.mrf.mxu0 }
 0x1b5   : > { %v1607_v21 = vpop.f32.mrf.mxu3 }
 0x1b6   : > { %v1157_v10 = vpop.f32.mrf.mxu1  ;;  %v1651_v27 = vadd.f32 %v1607_v21, %v1515_v46 }
 0x1b7   : > { %3072 = vmatmul.msk.bf16.gmra.mxu0 %vm810_vm4, %v4630_v55  ;;  %v1158_v57 = vadd.f32 %v1157_v10, %v4633_v11  ;;  %v4638_v10 = vld [vmem:[#allocation24_spill] sm:$0xff] }
 0x1b8   : > { %v1473_v8 = vpop.f32.mrf.mxu2  ;;  %v4133_v47 = vadd.f32 %v1761_v28, %v1651_v27 }
 0x1b9   : > { %3020 = vmatmul.msk.bf16.gmra.mxu1 %vm810_vm4, %v4630_v55  ;;  %v1516_v43 = vadd.f32 %v1473_v8, %v1155_v25  ;;  %v4639_v8 = vld [vmem:[#allocation2_spill] sm:$0xff] }
 0x1bc   : > { %v1763_v7 = vpop.f32.mrf.mxu0 }
 0x1bd   : > { %v1609_v30 = vpop.f32.mrf.mxu3  ;;  %3040 = vmatmul.msk.bf16.gmra.mxu2 %vm810_vm4, %v4632_v23 }
 0x1be   : > { %v1159_v1 = vpop.f32.mrf.mxu1  ;;  %v1652_v56 = vadd.f32 %v1609_v30, %v1516_v43 }
 0x1bf   : > { %v1160_v45 = vadd.f32 %v1159_v1, %v4636_v24  ;;  %v4640_v1 = vld [vmem:[#allocation29_spill] sm:$0xff] }
 0x1c0   : > { %v1476_v13 = vpop.f32.mrf.mxu2  ;;  %v4138_v15 = vadd.f32 %v1763_v7, %v1652_v56  ;;  %v4641_v56 = vld [vmem:[#allocation26_spill] sm:$0xff] }
 0x1c1   : > { %v1517_v59 = vadd.f32 %v1476_v13, %v1158_v57 }
 0x1c2   : > { %3056 = vmatmul.msk.bf16.gmra.mxu3 %vm810_vm4, %v4634_v38 }
 0x1c4   : > { %v1766_v44 = vpop.f32.mrf.mxu0 }
 0x1c5   : > { %v1612_v0 = vpop.f32.mrf.mxu3 }
 0x1c6   : > { %v1162_v51 = vpop.f32.mrf.mxu1  ;;  %v1653_v63 = vadd.f32 %v1612_v0, %v1517_v59 }
 0x1c7   : > { %3073 = vmatmul.msk.bf16.gmra.mxu0 %vm810_vm4, %v4635_v62  ;;  %v1163_v27 = vadd.f32 %v1162_v51, %v4638_v10 }
 0x1c8   : > { %v1478_v50 = vpop.f32.mrf.mxu2  ;;  %v4147_v22 = vadd.f32 %v1766_v44, %v1653_v63  ;;  %v4642_v63 = vld [vmem:[#allocation28_spill] sm:$0xff] }
 0x1c9   : > { %3021 = vmatmul.msk.bf16.gmra.mxu1 %vm810_vm4, %v4635_v62  ;;  %v1518_v16 = vadd.f32 %v1478_v50, %v1160_v45 }
 0x1cc   : > { %v1768_v61 = vpop.f32.mrf.mxu0 }
 0x1cd   : > { %v1614_v46 = vpop.f32.mrf.mxu3  ;;  %3041 = vmatmul.msk.bf16.gmra.mxu2 %vm810_vm4, %v4637_v32 }
 0x1ce   : > { %v1164_v28 = vpop.f32.mrf.mxu1  ;;  %v1654_v21 = vadd.f32 %v1614_v46, %v1518_v16 }
 0x1cf   : > { %v1165_v11 = vadd.f32 %v1164_v28, %v4641_v56 }
 0x1d0   : > { %v1481_v55 = vpop.f32.mrf.mxu2  ;;  %v4152_v4 = vadd.f32 %v1768_v61, %v1654_v21 }
 0x1d1   : > { %v1519_v25 = vadd.f32 %v1481_v55, %v1163_v27 }
 0x1d2   : > { %3057 = vmatmul.msk.bf16.gmra.mxu3 %vm810_vm4, %v4639_v8 }
 0x1d4   : > { %v1771_v43 = vpop.f32.mrf.mxu0 }
 0x1d5   : > { %v1617_v7 = vpop.f32.mrf.mxu3 }
 0x1d6   : > { %v1167_v30 = vpop.f32.mrf.mxu1  ;;  %v1655_v23 = vadd.f32 %v1617_v7, %v1519_v25 }
 0x1d7   : > { %3074 = vmatmul.msk.bf16.gmra.mxu0 %vm810_vm4, %v4640_v1  ;;  %v1168_v62 = vadd.f32 %v1167_v30, %v4642_v63  ;;  %v4648_v63 = vld [vmem:[#allocation11_spill] sm:$0xff] }
 0x1d8   : > { %v1483_v57 = vpop.f32.mrf.mxu2  ;;  %v4161_v13 = vadd.f32 %v1771_v43, %v1655_v23 }
 0x1d9   : > { %3022 = vmatmul.msk.bf16.gmra.mxu1 %vm810_vm4, %v4640_v1  ;;  %v1520_v59 = vadd.f32 %v1483_v57, %v1165_v11 }
 0x1dc   : > { %v1773_v38 = vpop.f32.mrf.mxu0 }
 0x1dd   : > { %v1619_v44 = vpop.f32.mrf.mxu3  ;;  %3042 = vmatmul.msk.bf16.gmra.mxu2 %vm810_vm4, %v3854_v58  ;;  %v4644_v58 = vld [vmem:[#allocation30_spill] sm:$0xff] }
 0x1de   : > { %v1169_v0 = vpop.f32.mrf.mxu1  ;;  %v1656_v51 = vadd.f32 %v1619_v44, %v1520_v59  ;;  %v4647_v59 = vld [vmem:[#allocation31_spill] sm:$0xff]  ;;  %v4193_v44 = vld [vmem:[%s4518_s2] ss:$0 sm:$0xff] }
 0x1df   : > { %v1170_v21 = vadd.f32 %v1169_v0, %v4644_v58 }
 0x1e0   : > { %v1486_v24 = vpop.f32.mrf.mxu2  ;;  %v4166_v45 = vadd.f32 %v1773_v38, %v1656_v51 }
 0x1e1   : > { %v1521_v50 = vadd.f32 %v1486_v24, %v1168_v62 }
 0x1e2   : > { %4643 = vst [vmem:[#allocation14_spill] sm:$0xff] %v4166_v45  ;;  %3058 = vmatmul.msk.bf16.gmra.mxu3 %vm810_vm4, %v3407_v3 }
 0x1e4   : > { %v1776_v16 = vpop.f32.mrf.mxu0 }
 0x1e5   : > { %v1622_v61 = vpop.f32.mrf.mxu3 }
 0x1e6   : > { %v1843_v46 = vpop.f32.mrf.mxu1  ;;  %v1657_v32 = vadd.f32 %v1622_v61, %v1521_v50 }
 0x1e7   : > { %v1923_v28 = vadd.f32 %v1843_v46, %v3869_v37  ;;  %3075 = vmatmul.msk.bf16.gmra.mxu0 %vm810_vm4, %v3871_v12 }
 0x1e8   : > { %v1488_v10 = vpop.f32.mrf.mxu2  ;;  %v4176_v27 = vadd.f32 %v1776_v16, %v1657_v32  ;;  %v4649_v32 = vld [vmem:[#allocation17_spill] sm:$0xff] }
 0x1e9   : > { %3023 = vmatmul.msk.bf16.gmra.mxu1 %vm810_vm4, %v3871_v12  ;;  %v1522_v55 = vadd.f32 %v1488_v10, %v1170_v21 }
 0x1ea   : > { %4645 = vst [vmem:[#allocation15_spill] sm:$0xff] %v4176_v27 }
 0x1ec   : > { %v1778_v25 = vpop.f32.mrf.mxu0 }
 0x1ed   : > { %v1624_v3 = vpop.f32.mrf.mxu3  ;;  %3043 = vmatmul.msk.bf16.gmra.mxu2 %vm810_vm4, %v3878_v36 }
 0x1ee   : > { %v1845_v8 = vpop.f32.mrf.mxu1  ;;  %v1658_v43 = vadd.f32 %v1624_v3, %v1522_v55 }
 0x1ef   : > { %v1924_v37 = vadd.f32 %v1845_v8, %v3882_v60 }
 0x1f0   : > { %v1975_v7 = vpop.f32.mrf.mxu2  ;;  %v4181_v30 = vadd.f32 %v1778_v25, %v1658_v43 }
 0x1f1   : > { %v2055_v23 = vadd.f32 %v1975_v7, %v1923_v28 }
 0x1f2   : > { %4646 = vst [vmem:[#allocation13_spill] sm:$0xff] %v4181_v30  ;;  %3059 = vmatmul.msk.bf16.gmra.mxu3 %vm810_vm4, %v3498_v33 }
 0x1f4   : > { %v2271_v12 = vpop.f32.mrf.mxu0 }
 0x1f5   : > { %v2133_v1 = vpop.f32.mrf.mxu3 }
 0x1f6   : > { %v1848_v56 = vpop.f32.mrf.mxu1  ;;  %v2213_v11 = vadd.f32 %v2133_v1, %v2055_v23 }
 0x1f7   : > { %v1925_v57 = vadd.f32 %v1848_v56, %v3895_v2  ;;  %3076 = vmatmul.msk.bf16.gmra.mxu0 %vm810_vm4, %v4647_v59 }
 0x1f8   : > { %v2351_v36 = vadd.f32 %v2271_v12, %v2213_v11  ;;  %v1977_v38 = vpop.f32.mrf.mxu2  ;;  %v4651_v12 = vld [vmem:[#allocation9_spill] sm:$0xff] }
 0x1f9   : > { %3024 = vmatmul.msk.bf16.gmra.mxu1 %vm810_vm4, %v4647_v59  ;;  %v2056_v60 = vadd.f32 %v1977_v38, %v1924_v37  ;;  %v4650_v37 = vld [vmem:[#allocation12_spill] sm:$0xff] }
 0x1fa   : > { %v4199_v24 = vadd.f32 %v4193_v44, %v2351_v36 }
 0x1fc   : > { %v2273_v33 = vpop.f32.mrf.mxu0  ;;  %v2420_v10 = vsel %vm2419_vm8, %v4199_v24, 0.0 }
 0x1fd   : > { %v2135_v0 = vpop.f32.mrf.mxu3  ;;  %3044 = vmatmul.msk.bf16.gmra.mxu2 %vm810_vm4, %v3904_v26  ;;  %v2491_v26 = vmul.f32 %v4199_v24, %v4199_v24 }
 0x1fe   : > { %v1850_v2 = vpop.f32.mrf.mxu1  ;;  %v2214_v51 = vadd.f32 %v2135_v0, %v2056_v60  ;;  %v4652_v0 = vld [vmem:[#allocation32_spill] sm:$0xff] }
 0x1ff   : > { %v1926_v62 = vadd.f32 %v1850_v2, %v4648_v63  ;;  %v2523_v23 = vsel %vm2419_vm8, %v2491_v26, 0.0 }
 0x200   : > { %v2352_v50 = vadd.f32 %v2273_v33, %v2214_v51  ;;  %v1980_v16 = vpop.f32.mrf.mxu2 }
 0x201   : > { %v2057_v61 = vadd.f32 %v1980_v16, %v1925_v57 }
 0x202   : > { %v4202_v46 = vadd.f32 %v4193_v44, %v2352_v50  ;;  %3060 = vmatmul.msk.bf16.gmra.mxu3 %vm810_vm4, %v4649_v32 }
 0x204   : > { %v2421_v28 = vsel %vm2419_vm8, %v4202_v46, 0.0  ;;  %v2492_v58 = vmul.f32 %v4202_v46, %v4202_v46  ;;  %v2276_v21 = vpop.f32.mrf.mxu0 }
 0x205   : > { %v2138_v55 = vpop.f32.mrf.mxu3  ;;  %v2422_v3 = vadd.f32 %v2421_v28, %v2420_v10 }
 0x206   : > { %v1853_v25 = vpop.f32.mrf.mxu1  ;;  %v2524_v8 = vsel %vm2419_vm8, %v2492_v58, 0.0  ;;  %v2215_v43 = vadd.f32 %v2138_v55, %v2057_v61 }
 0x207   : > { %v1927_v7 = vadd.f32 %v1853_v25, %v4650_v37  ;;  %3077 = vmatmul.msk.bf16.gmra.mxu0 %vm810_vm4, %v4651_v12  ;;  %v2525_v1 = vadd.f32 %v2524_v8, %v2523_v23 }
 0x208   : > { %v2353_v56 = vadd.f32 %v2276_v21, %v2215_v43  ;;  %v1982_v11 = vpop.f32.mrf.mxu2  ;;  %v4654_v21 = vld [vmem:[#allocation3_spill] sm:$0xff] }
 0x209   : > { %3025 = vmatmul.msk.bf16.gmra.mxu1 %vm810_vm4, %v4651_v12  ;;  %v2058_v57 = vadd.f32 %v1982_v11, %v1926_v62  ;;  %v4653_v62 = vld [vmem:[#allocation33_spill] sm:$0xff] }
 0x20a   : > { %v4222_v59 = vadd.f32 %v4193_v44, %v2353_v56 }
 0x20c   : > { %v2423_v36 = vsel %vm2419_vm8, %v4222_v59, 0.0  ;;  %v2493_v38 = vmul.f32 %v4222_v59, %v4222_v59  ;;  %v2278_v60 = vpop.f32.mrf.mxu0 }
 0x20d   : > { %v2140_v33 = vpop.f32.mrf.mxu3  ;;  %3045 = vmatmul.msk.bf16.gmra.mxu2 %vm810_vm4, %v4652_v0  ;;  %v2424_v51 = vadd.f32 %v2423_v36, %v2422_v3 }
 0x20e   : > { %v1855_v2 = vpop.f32.mrf.mxu1  ;;  %v2526_v63 = vsel %vm2419_vm8, %v2493_v38, 0.0  ;;  %v2216_v50 = vadd.f32 %v2140_v33, %v2058_v57 }
 0x20f   : > { %v1928_v16 = vadd.f32 %v1855_v2, %v4653_v62  ;;  %v2527_v61 = vadd.f32 %v2526_v63, %v2525_v1  ;;  %v4656_v1 = vld [vmem:[#allocation35_spill] sm:$0xff] }
 0x210   : > { %v2354_v32 = vadd.f32 %v2278_v60, %v2216_v50  ;;  %v1985_v26 = vpop.f32.mrf.mxu2 }
 0x211   : > { %v2059_v28 = vadd.f32 %v1985_v26, %v1927_v7  ;;  %v4655_v7 = vld [vmem:[#allocation34_spill] sm:$0xff] }
 0x212   : > { %v4233_v58 = vadd.f32 %v4193_v44, %v2354_v32  ;;  %3061 = vmatmul.msk.bf16.gmra.mxu3 %vm810_vm4, %v4654_v21 }
 0x214   : > { %v2425_v10 = vsel %vm2419_vm8, %v4233_v58, 0.0  ;;  %v2494_v55 = vmul.f32 %v4233_v58, %v4233_v58  ;;  %v2281_v25 = vpop.f32.mrf.mxu0 }
 0x215   : > { %v2143_v3 = vpop.f32.mrf.mxu3  ;;  %v2426_v43 = vadd.f32 %v2425_v10, %v2424_v51  ;;  %v4657_v51 = vld [vmem:[#allocation36_spill] sm:$0xff] }
 0x216   : > { %v1858_v8 = vpop.f32.mrf.mxu1  ;;  %v2528_v37 = vsel %vm2419_vm8, %v2494_v55, 0.0  ;;  %v2217_v23 = vadd.f32 %v2143_v3, %v2059_v28 }
 0x217   : > { %v1929_v12 = vadd.f32 %v1858_v8, %v4655_v7  ;;  %3078 = vmatmul.msk.bf16.gmra.mxu0 %vm810_vm4, %v4656_v1  ;;  %v2529_v56 = vadd.f32 %v2528_v37, %v2527_v61 }
 0x218   : > { %v2355_v11 = vadd.f32 %v2281_v25, %v2217_v23  ;;  %v1987_v57 = vpop.f32.mrf.mxu2  ;;  %v4659_v25 = vld [vmem:[#allocation4_spill] sm:$0xff] }
 0x219   : > { %3026 = vmatmul.msk.bf16.gmra.mxu1 %vm810_vm4, %v4656_v1  ;;  %v2060_v36 = vadd.f32 %v1987_v57, %v1928_v16  ;;  %v4658_v16 = vld [vmem:[#allocation37_spill] sm:$0xff]  ;;  %v4661_v57 = vld [vmem:[#allocation39_spill] sm:$0xff] }
 0x21a   : > { %v4248_v38 = vadd.f32 %v4193_v44, %v2355_v11 }
 0x21c   : > { %v2427_v60 = vsel %vm2419_vm8, %v4248_v38, 0.0  ;;  %v2495_v33 = vmul.f32 %v4248_v38, %v4248_v38  ;;  %v2283_v0 = vpop.f32.mrf.mxu0 }
 0x21d   : > { %v2145_v2 = vpop.f32.mrf.mxu3  ;;  %3046 = vmatmul.msk.bf16.gmra.mxu2 %vm810_vm4, %v4657_v51  ;;  %v2428_v50 = vadd.f32 %v2427_v60, %v2426_v43 }
 0x21e   : > { %v1860_v63 = vpop.f32.mrf.mxu1  ;;  %v2530_v62 = vsel %vm2419_vm8, %v2495_v33, 0.0  ;;  %v2218_v61 = vadd.f32 %v2145_v2, %v2060_v36 }
 0x21f   : > { %v1930_v32 = vadd.f32 %v1860_v63, %v4658_v16  ;;  %v2531_v26 = vadd.f32 %v2530_v62, %v2529_v56 }
 0x220   : > { %v2356_v28 = vadd.f32 %v2283_v0, %v2218_v61  ;;  %v1990_v21 = vpop.f32.mrf.mxu2  ;;  %v4662_v61 = vld [vmem:[#allocation6_spill] sm:$0xff] }
 0x221   : > { %v2061_v10 = vadd.f32 %v1990_v21, %v1929_v12  ;;  %v4660_v12 = vld [vmem:[#allocation38_spill] sm:$0xff] }
 0x222   : > { %v4259_v55 = vadd.f32 %v4193_v44, %v2356_v28  ;;  %3062 = vmatmul.msk.bf16.gmra.mxu3 %vm810_vm4, %v4659_v25 }
 0x224   : > { %v2429_v3 = vsel %vm2419_vm8, %v4259_v55, 0.0  ;;  %v2496_v8 = vmul.f32 %v4259_v55, %v4259_v55  ;;  %v2286_v43 = vpop.f32.mrf.mxu0 }
 0x225   : > { %v2148_v37 = vpop.f32.mrf.mxu3  ;;  %v2430_v7 = vadd.f32 %v2429_v3, %v2428_v50 }
 0x226   : > { %v1863_v23 = vpop.f32.mrf.mxu1  ;;  %v2532_v1 = vsel %vm2419_vm8, %v2496_v8, 0.0  ;;  %v2219_v56 = vadd.f32 %v2148_v37, %v2061_v10 }
 0x227   : > { %v1931_v11 = vadd.f32 %v1863_v23, %v4660_v12  ;;  %3079 = vmatmul.msk.bf16.gmra.mxu0 %vm810_vm4, %v4661_v57  ;;  %v2533_v36 = vadd.f32 %v2532_v1, %v2531_v26  ;;  %v4664_v23 = vld [vmem:[#allocation10_spill] sm:$0xff] }
 0x228   : > { %v2357_v60 = vadd.f32 %v2286_v43, %v2219_v56  ;;  %v1992_v33 = vpop.f32.mrf.mxu2 }
 0x229   : > { %3027 = vmatmul.msk.bf16.gmra.mxu1 %vm810_vm4, %v4661_v57  ;;  %v2062_v0 = vadd.f32 %v1992_v33, %v1930_v32  ;;  %v4663_v32 = vld [vmem:[#allocation7_spill] sm:$0xff] }
 0x22a   : > { %v4274_v2 = vadd.f32 %v4193_v44, %v2357_v60 }
 0x22c   : > { %v2431_v51 = vsel %vm2419_vm8, %v4274_v2, 0.0  ;;  %v2497_v63 = vmul.f32 %v4274_v2, %v4274_v2  ;;  %v2288_v50 = vpop.f32.mrf.mxu0 }
 0x22d   : > { %v2150_v62 = vpop.f32.mrf.mxu3  ;;  %3047 = vmatmul.msk.bf16.gmra.mxu2 %vm810_vm4, %v4662_v61  ;;  %v2432_v26 = vadd.f32 %v2431_v51, %v2430_v7  ;;  %v4666_v51 = vld [vmem:[#allocation41_spill] sm:$0xff] }
 0x22e   : > { %v1865_v16 = vpop.f32.mrf.mxu1  ;;  %v2534_v28 = vsel %vm2419_vm8, %v2497_v63, 0.0  ;;  %v2220_v21 = vadd.f32 %v2150_v62, %v2062_v0 }
 0x22f   : > { %v1932_v10 = vadd.f32 %v1865_v16, %v4663_v32  ;;  %v2535_v25 = vadd.f32 %v2534_v28, %v2533_v36 }
 0x230   : > { %v2358_v3 = vadd.f32 %v2288_v50, %v2220_v21  ;;  %v1995_v8 = vpop.f32.mrf.mxu2 }
 0x231   : > { %v2063_v43 = vadd.f32 %v1995_v8, %v1931_v11  ;;  %v4665_v11 = vld [vmem:[#allocation40_spill] sm:$0xff] }
 0x232   : > { %v4285_v37 = vadd.f32 %v4193_v44, %v2358_v3  ;;  %3063 = vmatmul.msk.bf16.gmra.mxu3 %vm810_vm4, %v4664_v23 }
 0x234   : > { %v2433_v1 = vsel %vm2419_vm8, %v4285_v37, 0.0  ;;  %v2498_v7 = vmul.f32 %v4285_v37, %v4285_v37  ;;  %v2291_v56 = vpop.f32.mrf.mxu0 }
 0x235   : > { %v2153_v12 = vpop.f32.mrf.mxu3  ;;  %v2434_v60 = vadd.f32 %v2433_v1, %v2432_v26 }
 0x236   : > { %v1868_v57 = vpop.f32.mrf.mxu1  ;;  %v2536_v36 = vsel %vm2419_vm8, %v2498_v7, 0.0  ;;  %v2221_v33 = vadd.f32 %v2153_v12, %v2063_v43  ;;  %v4667_v12 = vld [vmem:[#allocation42_spill] sm:$0xff] }
 0x237   : > { %v1933_v0 = vadd.f32 %v1868_v57, %v4665_v11  ;;  %3080 = vmatmul.msk.bf16.gmra.mxu0 %vm810_vm4, %v4666_v51  ;;  %v2537_v63 = vadd.f32 %v2536_v36, %v2535_v25  ;;  %v1816_v57 = vrot.slane %v4667_v12, 5  ;;  %v4324_v11 = vld [vmem:[%s3270_s6 + $0xd0] sm:$0xf] }
 0x238   : > { %v2359_v50 = vadd.f32 %v2291_v56, %v2221_v33  ;;  %v1997_v62 = vpop.f32.mrf.mxu2 }
 0x239   : > { %3028 = vmatmul.msk.bf16.gmra.mxu1 %vm810_vm4, %v4666_v51  ;;  %v2064_v61 = vadd.f32 %v1997_v62, %v1932_v10  ;;  %v1818_v62 = vrot.slane %v1816_v57, 4 }
 0x23a   : > { %v4300_v16 = vadd.f32 %v4193_v44, %v2359_v50 }
 0x23c   : > { %v2435_v26 = vsel %vm2419_vm8, %v4300_v16, 0.0  ;;  %v2499_v28 = vmul.f32 %v4300_v16, %v4300_v16  ;;  %v2293_v21 = vpop.f32.mrf.mxu0 }
 0x23d   : > { %v2155_v32 = vpop.f32.mrf.mxu3  ;;  %3048 = vmatmul.msk.bf16.gmra.mxu2 %vm810_vm4, %v4017_v40  ;;  %v2436_v3 = vadd.f32 %v2435_v26, %v2434_v60  ;;  %v4317_v40 = vld [vmem:[%s3270_s6 + $0xcc] sm:$0xf] }
 0x23e   : > { %v1870_v25 = vpop.f32.mrf.mxu1  ;;  %v2538_v10 = vsel %vm2419_vm8, %v2499_v28, 0.0  ;;  %v2222_v8 = vadd.f32 %v2155_v32, %v2064_v61  ;;  %v1819_v61 = vrot.slane %v4024_v42, 5  ;;  %v2088_v32 = vshrl.u32 %v4317_v40, 16 }
 0x23f   : > { %v1934_v43 = vadd.f32 %v1870_v25, %v4021_v49  ;;  %v2539_v23 = vadd.f32 %v2538_v10, %v2537_v63  ;;  %v4668_v63 = vld [vmem:[#allocation5_spill] sm:$0xff]  ;;  %v2091_v25 = vshll.u32 %v4317_v40, 16  ;;  %v2097_v10 = vshll.u32 %v4324_v11, 16 }
 0x240   : > { %v2360_v1 = vadd.f32 %v2293_v21, %v2222_v8  ;;  %v2000_v7 = vpop.f32.mrf.mxu2  ;;  %v3014_v50 = vrot.slane %v4668_v63, 9  ;;  %v2101_v8 = vshrl.u32 %v4324_v11, 16  ;;  %v1820_v12 = vsel %vm3599_vm7, %v1818_v62, %v1819_v61 }
 0x241   : > { %v2065_v56 = vadd.f32 %v2000_v7, %v1933_v0 }
 0x242   : > { %v4312_v36 = vadd.f32 %v4193_v44, %v2360_v1  ;;  %3064 = vmatmul.msk.bf16.gmra.mxu3 %vm810_vm4, %v3606_v17 }
 0x244   : > { %v2437_v60 = vsel %vm2419_vm8, %v4312_v36, 0.0  ;;  %v2500_v49 = vmul.f32 %v4312_v36, %v4312_v36  ;;  %v2296_v33 = vpop.f32.mrf.mxu0 }
 0x245   : > { %v2158_v0 = vpop.f32.mrf.mxu3  ;;  %v2438_v26 = vadd.f32 %v2437_v60, %v2436_v3  ;;  %v2090_v60 = vrot.slane %v2088_v32, 4 }
 0x246   : > { %v1873_v51 = vpop.f32.mrf.mxu1  ;;  %v2540_v17 = vsel %vm2419_vm8, %v2500_v49, 0.0  ;;  %v2223_v28 = vadd.f32 %v2158_v0, %v2065_v56  ;;  %v1817_v56 = vsel %vm3599_vm7, %v3014_v50, %v1816_v57  ;;  %v2093_v49 = vrot.slane %v2091_v25, 5 }
 0x247   : > { %v1935_v21 = vadd.f32 %v1873_v51, %v4038_v54  ;;  %3081 = vmatmul.msk.bf16.gmra.mxu0 %vm810_vm4, %v4040_v52  ;;  %v2541_v1 = vadd.f32 %v2540_v17, %v2539_v23  ;;  %v2099_v0 = vrot.slane %v2097_v10, 5  ;;  %v2103_v51 = vrot.slane %v2101_v8, 4 }
 0x248   : > { %v2361_v42 = vadd.f32 %v2296_v33, %v2223_v28  ;;  %v2002_v3 = vpop.f32.mrf.mxu2  ;;  %v365_v33 = vld [vmem:[%s3270_s6 + $0xd4] sm:$0x1]  ;;  %v1821_v57 = vunpack.c.l.b16 %v1817_v56  ;;  %v1822_v28 = vunpack.c.l.b16 %v1820_v12  ;;  %v2094_v25 = vor.u32 %v2093_v49, %v2090_v60 }
 0x249   : > { %3029 = vmatmul.msk.bf16.gmra.mxu1 %vm810_vm4, %v4040_v52  ;;  %v2066_v7 = vadd.f32 %v2002_v3, %v1934_v43  ;;  %v2104_v10 = vor.u32 %v2103_v51, %v2099_v0  ;;  %v2107_v8 = vshll.u32 %v365_v33, 16  ;;  %v2248_v60 = vrot.slane %v4324_v11, 5 }
 0x24a   : > { %v4339_v54 = vadd.f32 %v4193_v44, %v2361_v42 }
 0x24b   : > { %v2105_v56 = vrot.slane %v2104_v10, 4 }
 0x24c   : > { %v2439_v23 = vsel %vm2419_vm8, %v4339_v54, 0.0  ;;  %v2501_v52 = vmul.f32 %v4339_v54, %v4339_v54  ;;  %v2298_v43 = vpop.f32.mrf.mxu0 }
 0x24d   : > { %v2160_v63 = vpop.f32.mrf.mxu3  ;;  %3049 = vmatmul.msk.bf16.gmra.mxu2 %vm810_vm4, %v4049_v29  ;;  %v2440_v17 = vadd.f32 %v2439_v23, %v2438_v26  ;;  %v1823_v29 = vpack.c.b16 %v1822_v28, %v1821_v57  ;;  %v2095_v26 = vrot.slane %v2094_v25, 4 }
 0x24e   : > { %v1875_v50 = vpop.f32.mrf.mxu1  ;;  %v2542_v62 = vsel %vm2419_vm8, %v2501_v52, 0.0  ;;  %v2224_v61 = vadd.f32 %v2160_v63, %v2066_v7  ;;  %v2109_v7 = vrot.slane %v2107_v8, 5 }
 0x24f   : > { %v1936_v32 = vadd.f32 %v1875_v50, %v4052_v34  ;;  %v2543_v42 = vadd.f32 %v2542_v62, %v2541_v1  ;;  %v2100_v52 = vsel %vm3299_vm3, %v2095_v26, %v2099_v0  ;;  %v3067_v50 = vrot.slane %v4317_v40, 9 }
 0x250   : > { %v2362_v3 = vadd.f32 %v2298_v43, %v2224_v61  ;;  %v2005_v30 = vpop.f32.mrf.mxu2  ;;  %v2110_v43 = vsel %vm3299_vm3, %v2105_v56, %v2109_v7  ;;  %v2251_v62 = vrot.slane %v365_v33, 5  ;;  %v3104_v61 = vld [vmem:[%s3270_s6 + $0xcc] sm:$0xff]  ;;  %v2111_v28 = vunpack.c.l.b16 %v2100_v52 }
 0x251   : > { %v2067_v27 = vadd.f32 %v2005_v30, %v1935_v21  ;;  %v2112_v25 = vunpack.c.l.b16 %v2110_v43  ;;  %v2249_v8 = vsel %vm3599_vm7, %v3067_v50, %v2248_v60 }
 0x252   : > { %v4355_v45 = vadd.f32 %v4193_v44, %v2362_v3  ;;  %3065 = vmatmul.msk.bf16.gmra.mxu3 %vm810_vm4, %v4056_v5  ;;  %v2253_v7 = vunpack.c.l.b16 %v2249_v8 }
 0x253   : > { %v2113_v26 = vpack.c.b16 %v2112_v25, %v2111_v28 }
 0x254   : > { %v2441_v34 = vsel %vm2419_vm8, %v4355_v45, 0.0  ;;  %v2502_v12 = vmul.f32 %v4355_v45, %v4355_v45  ;;  %v2301_v1 = vpop.f32.mrf.mxu0 }
 0x255   : > { %v2163_v30 = vpop.f32.mrf.mxu3  ;;  %v2442_v49 = vadd.f32 %v2441_v34, %v2440_v17  ;;  %v2250_v17 = vrot.slane %v2248_v60, 4 }
 0x256   : > { %v1878_v21 = vpop.f32.mrf.mxu1  ;;  %v2544_v51 = vsel %vm2419_vm8, %v2502_v12, 0.0  ;;  %v2225_v5 = vadd.f32 %v2163_v30, %v2067_v27 }
 0x257   : > { %v1937_v23 = vadd.f32 %v1878_v21, %v4063_v41  ;;  %3082 = vmatmul.msk.bf16.gmra.mxu0 %vm810_vm4, %v1823_v29  ;;  %v2545_v63 = vadd.f32 %v2544_v51, %v2543_v42  ;;  %v2252_v40 = vsel %vm3599_vm7, %v2250_v17, %v2251_v62 }
 0x258   : > { %v2363_v57 = vadd.f32 %v2301_v1, %v2225_v5  ;;  %v2007_v11 = vpop.f32.mrf.mxu2  ;;  %v2254_v34 = vunpack.c.l.b16 %v2252_v40 }
 0x259   : > { %3030 = vmatmul.msk.bf16.gmra.mxu1 %vm810_vm4, %v1823_v29  ;;  %v2068_v27 = vadd.f32 %v2007_v11, %v1936_v32 }
 0x25a   : > { %v4375_v41 = vadd.f32 %v4193_v44, %v2363_v57  ;;  %v2255_v21 = vpack.c.b16 %v2254_v34, %v2253_v7 }
 0x25c   : > { %v2443_v39 = vsel %vm2419_vm8, %v4375_v41, 0.0  ;;  %v2503_v0 = vmul.f32 %v4375_v41, %v4375_v41  ;;  %v2303_v10 = vpop.f32.mrf.mxu0 }
 0x25d   : > { %v2165_v33 = vpop.f32.mrf.mxu3  ;;  %3050 = vmatmul.msk.bf16.gmra.mxu2 %vm810_vm4, %v3104_v61  ;;  %v2444_v42 = vadd.f32 %v2443_v39, %v2442_v49 }
 0x25e   : > { %v1880_v32 = vpop.f32.mrf.mxu1  ;;  %v2546_v3 = vsel %vm2419_vm8, %v2503_v0, 0.0  ;;  %v2226_v29 = vadd.f32 %v2165_v33, %v2068_v27 }
 0x25f   : > { %v1938_v56 = vadd.f32 %v1880_v32, %v4068_v35  ;;  %v2547_v12 = vadd.f32 %v2546_v3, %v2545_v63 }
 0x260   : > { %v2364_v1 = vadd.f32 %v2303_v10, %v2226_v29  ;;  %v2010_v30 = vpop.f32.mrf.mxu2 }
 0x261   : > { %v2069_v60 = vadd.f32 %v2010_v30, %v1937_v23 }
 0x262   : > { %v4389_v18 = vadd.f32 %v4193_v44, %v2364_v1  ;;  %3066 = vmatmul.msk.bf16.gmra.mxu3 %vm810_vm4, %v2113_v26 }
 0x264   : > { %v2445_v49 = vsel %vm2419_vm8, %v4389_v18, 0.0  ;;  %v2504_v51 = vmul.f32 %v4389_v18, %v4389_v18  ;;  %v2306_v5 = vpop.f32.mrf.mxu0 }
 0x265   : > { %v2168_v35 = vpop.f32.mrf.mxu3  ;;  %v2446_v43 = vadd.f32 %v2445_v49, %v2444_v42 }
 0x266   : > { %v1883_v52 = vpop.f32.mrf.mxu1  ;;  %v2548_v63 = vsel %vm2419_vm8, %v2504_v51, 0.0  ;;  %v2227_v57 = vadd.f32 %v2168_v35, %v2069_v60 }
 0x267   : > { %3083 = vmatmul.msk.bf16.gmra.mxu0 %vm810_vm4, %v2255_v21  ;;  %v2549_v23 = vadd.f32 %v2548_v63, %v2547_v12  ;;  %v1939_v32 = vadd.f32 %v1883_v52, %v4077_v48 }
 0x268   : > { %v2365_v11 = vadd.f32 %v2306_v5, %v2227_v57  ;;  %v2012_v50 = vpop.f32.mrf.mxu2 }
 0x269   : > { %v2070_v17 = vadd.f32 %v2012_v50, %v1938_v56 }
 0x26a   : > { %v4399_v62 = vadd.f32 %v4193_v44, %v2365_v11 }
 0x26c   : > { %v2447_v27 = vsel %vm2419_vm8, %v4399_v62, 0.0  ;;  %v2505_v61 = vmul.f32 %v4399_v62, %v4399_v62  ;;  %v2308_v28 = vpop.f32.mrf.mxu0 }
 0x26d   : > { %v2170_v25 = vpop.f32.mrf.mxu3  ;;  %v2448_v0 = vadd.f32 %v2447_v27, %v2446_v43 }
 0x26e   : > { %v1885_v39 = vpop.f32.mrf.mxu1  ;;  %v2550_v10 = vsel %vm2419_vm8, %v2505_v61, 0.0  ;;  %v2228_v8 = vadd.f32 %v2170_v25, %v2070_v17 }
 0x26f   : > { %v2551_v40 = vadd.f32 %v2550_v10, %v2549_v23  ;;  %v1940_v49 = vadd.f32 %v1885_v39, %v4082_v14 }
 0x270   : > { %v2366_v33 = vadd.f32 %v2308_v28, %v2228_v8  ;;  %v2015_v42 = vpop.f32.mrf.mxu2 }
 0x271   : > { %v2071_v29 = vadd.f32 %v2015_v42, %v1939_v32 }
 0x272   : > { %v4408_v3 = vadd.f32 %v4193_v44, %v2366_v33 }
 0x274   : > { %v2449_v26 = vsel %vm2419_vm8, %v4408_v3, 0.0  ;;  %v2506_v56 = vmul.f32 %v4408_v3, %v4408_v3  ;;  %v2311_v7 = vpop.f32.mrf.mxu0 }
 0x275   : > { %v2173_v34 = vpop.f32.mrf.mxu3  ;;  %v2450_v1 = vadd.f32 %v2449_v26, %v2448_v0 }
 0x276   : > { %v1888_v12 = vpop.f32.mrf.mxu1  ;;  %v2552_v30 = vsel %vm2419_vm8, %v2506_v56, 0.0  ;;  %v2229_v60 = vadd.f32 %v2173_v34, %v2071_v29 }
 0x277   : > { %v2553_v21 = vadd.f32 %v2552_v30, %v2551_v40  ;;  %v1941_v14 = vadd.f32 %v1888_v12, %v4091_v6 }
 0x278   : > { %v2367_v48 = vadd.f32 %v2311_v7, %v2229_v60  ;;  %v2017_v51 = vpop.f32.mrf.mxu2 }
 0x279   : > { %v2072_v5 = vadd.f32 %v2017_v51, %v1940_v49 }
 0x27a   : > { %v2403_v35 = vadd.f32 %v4193_v44, %v2367_v48 }
 0x27c   : > { %v2313_v52 = vpop.f32.mrf.mxu0  ;;  %v3133_v43 = vpack.i.bf16 %v2403_v35, %v4199_v24  ;;  %v2451_v63 = vsel %vm2419_vm8, %v2403_v35, 0.0  ;;  %v2507_v57 = vmul.f32 %v2403_v35, %v2403_v35 }
 0x27d   : > { %v2175_v23 = vpop.f32.mrf.mxu3  ;;  %v2452_v11 = vadd.f32 %v2451_v63, %v2450_v1 }
 0x27e   : > { %v1890_v50 = vpop.f32.mrf.mxu1  ;;  %v2230_v17 = vadd.f32 %v2175_v23, %v2072_v5  ;;  %3134 = vxpose.xlu0.b32.start [1/16] (narrow) %v3133_v43, 8  ;;  %v2554_v27 = vsel %vm2419_vm8, %v2507_v57, 0.0 }
 0x27f   : > { %v2555_v61 = vadd.f32 %v2554_v27, %v2553_v21  ;;  %v1942_v6 = vadd.f32 %v1890_v50, %v4096_v19 }
 0x280   : > { %v2368_v28 = vadd.f32 %v2313_v52, %v2230_v17  ;;  %v2020_v25 = vpop.f32.mrf.mxu2 }
 0x281   : > { %v2073_v0 = vadd.f32 %v2020_v25, %v1941_v14 }
 0x282   : > { %v2404_v39 = vadd.f32 %v4193_v44, %v2368_v28 }
 0x284   : > { %v2453_v24 = vsel %vm2419_vm8, %v2404_v39, 0.0  ;;  %v2508_v10 = vmul.f32 %v2404_v39, %v2404_v39  ;;  %v2316_v8 = vpop.f32.mrf.mxu0  ;;  %v3135_v40 = vpack.i.bf16 %v2404_v39, %v4202_v46 }
 0x285   : > { %v2178_v33 = vpop.f32.mrf.mxu3  ;;  %v2454_v32 = vadd.f32 %v2453_v24, %v2452_v11 }
 0x286   : > { %v1893_v42 = vpop.f32.mrf.mxu1  ;;  %v2556_v29 = vsel %vm2419_vm8, %v2508_v10, 0.0  ;;  %v2231_v26 = vadd.f32 %v2178_v33, %v2073_v0  ;;  %3136 = vxpose.xlu0.b32.cont [2/16] (narrow) %v3135_v40, 8 }
 0x287   : > { %v2557_v56 = vadd.f32 %v2556_v29, %v2555_v61  ;;  %v1943_v19 = vadd.f32 %v1893_v42, %v4105_v31 }
 0x288   : > { %v2369_v7 = vadd.f32 %v2316_v8, %v2231_v26  ;;  %v2022_v34 = vpop.f32.mrf.mxu2 }
 0x289   : > { %v2074_v1 = vadd.f32 %v2022_v34, %v1942_v6 }
 0x28a   : > { %v2405_v12 = vadd.f32 %v4193_v44, %v2369_v7 }
 0x28c   : > { %v2455_v30 = vsel %vm2419_vm8, %v2405_v12, 0.0  ;;  %v2509_v60 = vmul.f32 %v2405_v12, %v2405_v12  ;;  %v2318_v21 = vpop.f32.mrf.mxu0  ;;  %v3137_v46 = vpack.i.bf16 %v2405_v12, %v4222_v59 }
 0x28d   : > { %v2456_v48 = vadd.f32 %v2455_v30, %v2454_v32  ;;  %v2180_v49 = vpop.f32.mrf.mxu3 }
 0x28e   : > { %v1895_v51 = vpop.f32.mrf.mxu1  ;;  %v2558_v5 = vsel %vm2419_vm8, %v2509_v60, 0.0  ;;  %v2232_v35 = vadd.f32 %v2180_v49, %v2074_v1  ;;  %3138 = vxpose.xlu0.b32.cont [3/16] (narrow) %v3137_v46, 8 }
 0x28f   : > { %v2559_v52 = vadd.f32 %v2558_v5, %v2557_v56  ;;  %v1944_v31 = vadd.f32 %v1895_v51, %v4110_v20 }
 0x290   : > { %v2370_v43 = vadd.f32 %v2318_v21, %v2232_v35  ;;  %v2025_v63 = vpop.f32.mrf.mxu2 }
 0x291   : > { %v2075_v23 = vadd.f32 %v2025_v63, %v1943_v19 }
 0x292   : > { %v2406_v57 = vadd.f32 %v4193_v44, %v2370_v43 }
 0x294   : > { %v2457_v11 = vsel %vm2419_vm8, %v2406_v57, 0.0  ;;  %v2510_v50 = vmul.f32 %v2406_v57, %v2406_v57  ;;  %v2321_v17 = vpop.f32.mrf.mxu0  ;;  %v3139_v59 = vpack.i.bf16 %v2406_v57, %v4233_v58 }
 0x295   : > { %v2458_v27 = vadd.f32 %v2457_v11, %v2456_v48  ;;  %v2183_v61 = vpop.f32.mrf.mxu3 }
 0x296   : > { %v1898_v28 = vpop.f32.mrf.mxu1  ;;  %v2560_v14 = vsel %vm2419_vm8, %v2510_v50, 0.0  ;;  %v2233_v25 = vadd.f32 %v2183_v61, %v2075_v23  ;;  %3140 = vxpose.xlu0.b32.cont [4/16] (narrow) %v3139_v59, 8 }
 0x297   : > { %v2561_v39 = vadd.f32 %v2560_v14, %v2559_v52  ;;  %v1945_v20 = vadd.f32 %v1898_v28, %v4119_v9 }
 0x298   : > { %v2371_v0 = vadd.f32 %v2321_v17, %v2233_v25  ;;  %v2027_v24 = vpop.f32.mrf.mxu2 }
 0x299   : > { %v2076_v8 = vadd.f32 %v2027_v24, %v1944_v31 }
 0x29a   : > { %v2407_v10 = vadd.f32 %v4193_v44, %v2371_v0 }
 0x29c   : > { %v2459_v40 = vsel %vm2419_vm8, %v2407_v10, 0.0  ;;  %v2511_v33 = vmul.f32 %v2407_v10, %v2407_v10  ;;  %v2323_v32 = vpop.f32.mrf.mxu0  ;;  %v3141_v58 = vpack.i.bf16 %v2407_v10, %v4248_v38 }
 0x29d   : > { %v2460_v42 = vadd.f32 %v2459_v40, %v2458_v27  ;;  %v2185_v29 = vpop.f32.mrf.mxu3 }
 0x29e   : > { %v1900_v26 = vpop.f32.mrf.mxu1  ;;  %v2562_v56 = vsel %vm2419_vm8, %v2511_v33, 0.0  ;;  %v2234_v7 = vadd.f32 %v2185_v29, %v2076_v8  ;;  %3142 = vxpose.xlu0.b32.cont [5/16] (narrow) %v3141_v58, 8 }
 0x29f   : > { %v2563_v6 = vadd.f32 %v2562_v56, %v2561_v39  ;;  %v1946_v9 = vadd.f32 %v1900_v26, %v4124_v53 }
 0x2a0   : > { %v2372_v34 = vadd.f32 %v2323_v32, %v2234_v7  ;;  %v2030_v12 = vpop.f32.mrf.mxu2 }
 0x2a1   : > { %v2077_v30 = vadd.f32 %v2030_v12, %v1945_v20 }
 0x2a2   : > { %v2408_v1 = vadd.f32 %v4193_v44, %v2372_v34 }
 0x2a4   : > { %v2461_v60 = vsel %vm2419_vm8, %v2408_v1, 0.0  ;;  %v2512_v21 = vmul.f32 %v2408_v1, %v2408_v1  ;;  %v2326_v46 = vpop.f32.mrf.mxu0  ;;  %v3143_v38 = vpack.i.bf16 %v2408_v1, %v4259_v55 }
 0x2a5   : > { %v2462_v48 = vadd.f32 %v2461_v60, %v2460_v42  ;;  %v2188_v49 = vpop.f32.mrf.mxu3 }
 0x2a6   : > { %v1903_v51 = vpop.f32.mrf.mxu1  ;;  %v2564_v5 = vsel %vm2419_vm8, %v2512_v21, 0.0  ;;  %v2235_v35 = vadd.f32 %v2188_v49, %v2077_v30  ;;  %3144 = vxpose.xlu0.b32.cont [6/16] (narrow) %v3143_v38, 8 }
 0x2a7   : > { %v2565_v52 = vadd.f32 %v2564_v5, %v2563_v6  ;;  %v1947_v53 = vadd.f32 %v1903_v51, %v4133_v47 }
 0x2a8   : > { %v2373_v43 = vadd.f32 %v2326_v46, %v2235_v35  ;;  %v2032_v19 = vpop.f32.mrf.mxu2 }
 0x2a9   : > { %v2078_v57 = vadd.f32 %v2032_v19, %v1946_v9 }
 0x2aa   : > { %v2409_v63 = vadd.f32 %v4193_v44, %v2373_v43 }
 0x2ac   : > { %v2463_v23 = vsel %vm2419_vm8, %v2409_v63, 0.0  ;;  %v2513_v11 = vmul.f32 %v2409_v63, %v2409_v63  ;;  %v2328_v50 = vpop.f32.mrf.mxu0  ;;  %v3145_v55 = vpack.i.bf16 %v2409_v63, %v4274_v2 }
 0x2ad   : > { %v2464_v17 = vadd.f32 %v2463_v23, %v2462_v48  ;;  %v2190_v59 = vpop.f32.mrf.mxu3 }
 0x2ae   : > { %v1905_v27 = vpop.f32.mrf.mxu1  ;;  %v2566_v61 = vsel %vm2419_vm8, %v2513_v11, 0.0  ;;  %v2236_v28 = vadd.f32 %v2190_v59, %v2078_v57  ;;  %3146 = vxpose.xlu0.b32.cont [7/16] (narrow) %v3145_v55, 8 }
 0x2af   : > { %v2567_v14 = vadd.f32 %v2566_v61, %v2565_v52  ;;  %v1948_v47 = vadd.f32 %v1905_v27, %v4138_v15 }
 0x2b0   : > { %v2374_v25 = vadd.f32 %v2328_v50, %v2236_v28  ;;  %v2035_v39 = vpop.f32.mrf.mxu2 }
 0x2b1   : > { %v2079_v31 = vadd.f32 %v2035_v39, %v1947_v53 }
 0x2b2   : > { %v2410_v0 = vadd.f32 %v4193_v44, %v2374_v25 }
 0x2b4   : > { %v2465_v24 = vsel %vm2419_vm8, %v2410_v0, 0.0  ;;  %v2514_v10 = vmul.f32 %v2410_v0, %v2410_v0  ;;  %v2331_v8 = vpop.f32.mrf.mxu0  ;;  %v3147_v2 = vpack.i.bf16 %v2410_v0, %v4285_v37 }
 0x2b5   : > { %v2466_v40 = vadd.f32 %v2465_v24, %v2464_v17  ;;  %v2193_v33 = vpop.f32.mrf.mxu3 }
 0x2b6   : > { %v1908_v32 = vpop.f32.mrf.mxu1  ;;  %v2568_v58 = vsel %vm2419_vm8, %v2514_v10, 0.0  ;;  %v2237_v42 = vadd.f32 %v2193_v33, %v2079_v31  ;;  %3148 = vxpose.xlu0.b32.cont [8/16] (narrow) %v3147_v2, 8 }
 0x2b7   : > { %v2569_v29 = vadd.f32 %v2568_v58, %v2567_v14  ;;  %v1949_v15 = vadd.f32 %v1908_v32, %v4147_v22 }
 0x2b8   : > { %v2375_v26 = vadd.f32 %v2331_v8, %v2237_v42  ;;  %v2037_v56 = vpop.f32.mrf.mxu2 }
 0x2b9   : > { %v2080_v6 = vadd.f32 %v2037_v56, %v1948_v47 }
 0x2ba   : > { %v2411_v7 = vadd.f32 %v4193_v44, %v2375_v26 }
 0x2bc   : > { %v2467_v34 = vsel %vm2419_vm8, %v2411_v7, 0.0  ;;  %v2515_v20 = vmul.f32 %v2411_v7, %v2411_v7  ;;  %v2333_v12 = vpop.f32.mrf.mxu0  ;;  %v3149_v37 = vpack.i.bf16 %v2411_v7, %v4300_v16 }
 0x2bd   : > { %v2468_v1 = vadd.f32 %v2467_v34, %v2466_v40  ;;  %v2195_v30 = vpop.f32.mrf.mxu3 }
 0x2be   : > { %v1910_v60 = vpop.f32.mrf.mxu1  ;;  %v2570_v21 = vsel %vm2419_vm8, %v2515_v20, 0.0  ;;  %v2238_v46 = vadd.f32 %v2195_v30, %v2080_v6  ;;  %3150 = vxpose.xlu0.b32.cont [9/16] (narrow) %v3149_v37, 8 }
 0x2bf   : > { %v2571_v38 = vadd.f32 %v2570_v21, %v2569_v29  ;;  %v1950_v22 = vadd.f32 %v1910_v60, %v4152_v4 }
 0x2c0   : > { %v2376_v48 = vadd.f32 %v2333_v12, %v2238_v46  ;;  %v2040_v49 = vpop.f32.mrf.mxu2 }
 0x2c1   : > { %v2081_v5 = vadd.f32 %v2040_v49, %v1949_v15  ;;  %v4670_v49 = vld [vmem:[#allocation15_spill] sm:$0xff] }
 0x2c2   : > { %v2412_v51 = vadd.f32 %v4193_v44, %v2376_v48 }
 0x2c4   : > { %v2469_v35 = vsel %vm2419_vm8, %v2412_v51, 0.0  ;;  %v2516_v52 = vmul.f32 %v2412_v51, %v2412_v51  ;;  %v2336_v43 = vpop.f32.mrf.mxu0  ;;  %v3151_v16 = vpack.i.bf16 %v2412_v51, %v4312_v36 }
 0x2c5   : > { %v2470_v9 = vadd.f32 %v2469_v35, %v2468_v1  ;;  %v2198_v19 = vpop.f32.mrf.mxu3 }
 0x2c6   : > { %v2572_v63 = vsel %vm2419_vm8, %v2516_v52, 0.0  ;;  %v2239_v57 = vadd.f32 %v2198_v19, %v2081_v5  ;;  %3152 = vxpose.xlu0.b32.cont [10/16] (narrow) %v3151_v16, 8  ;;  %v1913_v23 = vpop.f32.mrf.mxu1 }
 0x2c7   : > { %v2573_v11 = vadd.f32 %v2572_v63, %v2571_v38  ;;  %v1951_v4 = vadd.f32 %v1913_v23, %v4161_v13  ;;  %v4669_v13 = vld [vmem:[#allocation14_spill] sm:$0xff] }
 0x2c8   : > { %v2377_v50 = vadd.f32 %v2336_v43, %v2239_v57  ;;  %v2042_v55 = vpop.f32.mrf.mxu2 }
 0x2c9   : > { %v2082_v59 = vadd.f32 %v2042_v55, %v1950_v22  ;;  %v4671_v55 = vld [vmem:[#allocation13_spill] sm:$0xff] }
 0x2ca   : > { %v2413_v17 = vadd.f32 %v4193_v44, %v2377_v50 }
 0x2cc   : > { %v2471_v27 = vsel %vm2419_vm8, %v2413_v17, 0.0  ;;  %v2517_v61 = vmul.f32 %v2413_v17, %v2413_v17  ;;  %v2338_v28 = vpop.f32.mrf.mxu0  ;;  %v3153_v36 = vpack.i.bf16 %v2413_v17, %v4339_v54 }
 0x2cd   : > { %v2472_v14 = vadd.f32 %v2471_v27, %v2470_v9  ;;  %v2200_v25 = vpop.f32.mrf.mxu3 }
 0x2ce   : > { %v2574_v53 = vsel %vm2419_vm8, %v2517_v61, 0.0  ;;  %v2240_v39 = vadd.f32 %v2200_v25, %v2082_v59  ;;  %3154 = vxpose.xlu0.b32.cont [11/16] (narrow) %v3153_v36, 8  ;;  %v1915_v10 = vpop.f32.mrf.mxu1 }
 0x2cf   : > { %v2575_v0 = vadd.f32 %v2574_v53, %v2573_v11  ;;  %v1952_v7 = vadd.f32 %v1915_v10, %v4669_v13 }
 0x2d0   : > { %v2378_v31 = vadd.f32 %v2338_v28, %v2240_v39  ;;  %v2045_v24 = vpop.f32.mrf.mxu2 }
 0x2d1   : > { %v2083_v2 = vadd.f32 %v2045_v24, %v1951_v4 }
 0x2d2   : > { %v2414_v8 = vadd.f32 %v4193_v44, %v2378_v31 }
 0x2d4   : > { %v2473_v40 = vsel %vm2419_vm8, %v2414_v8, 0.0  ;;  %v2518_v33 = vmul.f32 %v2414_v8, %v2414_v8  ;;  %v2341_v32 = vpop.f32.mrf.mxu0  ;;  %v3155_v54 = vpack.i.bf16 %v2414_v8, %v4355_v45 }
 0x2d5   : > { %v2474_v58 = vadd.f32 %v2473_v40, %v2472_v14  ;;  %v2203_v42 = vpop.f32.mrf.mxu3 }
 0x2d6   : > { %v2576_v29 = vsel %vm2419_vm8, %v2518_v33, 0.0  ;;  %v2241_v26 = vadd.f32 %v2203_v42, %v2083_v2  ;;  %3156 = vxpose.xlu0.b32.cont [12/16] (narrow) %v3155_v54, 8  ;;  %v1918_v12 = vpop.f32.mrf.mxu1 }
 0x2d7   : > { %v2577_v47 = vadd.f32 %v2576_v29, %v2575_v0  ;;  %v1953_v51 = vadd.f32 %v1918_v12, %v4670_v49 }
 0x2d8   : > { %v2379_v56 = vadd.f32 %v2341_v32, %v2241_v26  ;;  %v2047_v6 = vpop.f32.mrf.mxu2 }
 0x2d9   : > { %v2084_v20 = vadd.f32 %v2047_v6, %v1952_v7 }
 0x2da   : > { %v2415_v34 = vadd.f32 %v4193_v44, %v2379_v56 }
 0x2dc   : > { %v2475_v37 = vsel %vm2419_vm8, %v2415_v34, 0.0  ;;  %v2519_v1 = vmul.f32 %v2415_v34, %v2415_v34  ;;  %v2343_v30 = vpop.f32.mrf.mxu0  ;;  %v3157_v45 = vpack.i.bf16 %v2415_v34, %v4375_v41 }
 0x2dd   : > { %v2476_v60 = vadd.f32 %v2475_v37, %v2474_v58  ;;  %v2205_v21 = vpop.f32.mrf.mxu3 }
 0x2de   : > { %v2578_v46 = vsel %vm2419_vm8, %v2519_v1, 0.0  ;;  %v2242_v38 = vadd.f32 %v2205_v21, %v2084_v20  ;;  %3158 = vxpose.xlu0.b32.cont [13/16] (narrow) %v3157_v45, 8  ;;  %v1920_v9 = vpop.f32.mrf.mxu1 }
 0x2df   : > { %v2579_v48 = vadd.f32 %v2578_v46, %v2577_v47  ;;  %v1954_v17 = vadd.f32 %v1920_v9, %v4671_v55 }
 0x2e0   : > { %v2380_v15 = vadd.f32 %v2343_v30, %v2242_v38  ;;  %v2050_v5 = vpop.f32.mrf.mxu2 }
 0x2e1   : > { %v2085_v52 = vadd.f32 %v2050_v5, %v1953_v51 }
 0x2e2   : > { %v2416_v35 = vadd.f32 %v4193_v44, %v2380_v15  ;;  %v3180_v44 = vld [vmem:[%s4518_s2] ss:$0 sm:$0xff] }
 0x2e4   : > { %v2477_v43 = vsel %vm2419_vm8, %v2416_v35, 0.0  ;;  %v2520_v16 = vmul.f32 %v2416_v35, %v2416_v35  ;;  %v3159_v41 = vpack.i.bf16 %v2416_v35, %v4389_v18  ;;  %v2346_v63 = vpop.f32.mrf.mxu0 }
 0x2e5   : > { %v2478_v19 = vadd.f32 %v2477_v43, %v2476_v60  ;;  %v2208_v57 = vpop.f32.mrf.mxu3 }
 0x2e6   : > { %v2580_v23 = vsel %vm2419_vm8, %v2520_v16, 0.0  ;;  %v2243_v11 = vadd.f32 %v2208_v57, %v2085_v52  ;;  %3160 = vxpose.xlu0.b32.cont [14/16] (narrow) %v3159_v41, 8 }
 0x2e7   : > { %v2581_v50 = vadd.f32 %v2580_v23, %v2579_v48 }
 0x2e8   : > { %v2381_v22 = vadd.f32 %v2346_v63, %v2243_v11  ;;  %v2052_v59 = vpop.f32.mrf.mxu2 }
 0x2e9   : > { %v2086_v61 = vadd.f32 %v2052_v59, %v1954_v17 }
 0x2ea   : > { %v2417_v27 = vadd.f32 %v3180_v44, %v2381_v22 }
 0x2ec   : > { %v2479_v18 = vsel %vm2419_vm8, %v2417_v27, 0.0  ;;  %v2521_v28 = vmul.f32 %v2417_v27, %v2417_v27  ;;  %v3161_v36 = vpack.i.bf16 %v2417_v27, %v4399_v62  ;;  %v2348_v31 = vpop.f32.mrf.mxu0 }
 0x2ed   : > { %v2480_v14 = vadd.f32 %v2479_v18, %v2478_v19  ;;  %v2210_v25 = vpop.f32.mrf.mxu3 }
 0x2ee   : > { %v2582_v53 = vsel %vm2419_vm8, %v2521_v28, 0.0  ;;  %v2244_v39 = vadd.f32 %v2210_v25, %v2086_v61  ;;  %3162 = vxpose.xlu0.b32.cont [15/16] (narrow) %v3161_v36, 8 }
 0x2ef   : > { %v2583_v0 = vadd.f32 %v2582_v53, %v2581_v50 }
 0x2f0   : > { %v2382_v4 = vadd.f32 %v2348_v31, %v2244_v39 }
 0x2f2   : > { %v2418_v24 = vadd.f32 %v3180_v44, %v2382_v4 }
 0x2f4   : > { %v2481_v10 = vsel %vm2419_vm8, %v2418_v24, 0.0  ;;  %v2522_v8 = vmul.f32 %v2418_v24, %v2418_v24  ;;  %v3163_v2 = vpack.i.bf16 %v2418_v24, %v4408_v3 }
 0x2f5   : > { %v2482_v40 = vadd.f32 %v2481_v10, %v2480_v14 }
 0x2f6   : > { %v2584_v33 = vsel %vm2419_vm8, %v2522_v8, 0.0  ;;  %3164 = vxpose.xlu0.b32.end [16/16] (narrow) %v3163_v2, 8 }
 0x2f7   : > { %v2483_v62 = vrot.slane %v2482_v40, 4  ;;  %v2585_v32 = vadd.f32 %v2584_v33, %v2583_v0 }
 0x2f9   : > { %v2484_v54 = vadd.f32 %v2483_v62, %v2482_v40  ;;  %v2586_v58 = vrot.slane %v2585_v32, 4 }
 0x2fb   : > { %v2485_v42 = vrot.slane %v2484_v54, 2  ;;  %v2587_v29 = vadd.f32 %v2586_v58, %v2585_v32 }
 0x2fd   : > { %v2486_v26 = vadd.f32 %v2485_v42, %v2484_v54  ;;  %v2588_v47 = vrot.slane %v2587_v29, 2 }
 0x2ff   : > { %v2487_v56 = vrot.slane %v2486_v26, 1  ;;  %v2589_v13 = vadd.f32 %v2588_v47, %v2587_v29 }
 0x301   : > { %v2488_v3 = vadd.f32 %v2487_v56, %v2486_v26  ;;  %v2590_v7 = vrot.slane %v2589_v13, 1 }
 0x303   : > { %2490 = vst.msk [vmem:[%s304_s17] sm:$0x1] %vm2489_vm9, %v2488_v3  ;;  %v2591_v6 = vadd.f32 %v2590_v7, %v2589_v13 }
 0x305   : > { %2592 = vst.msk [vmem:[%s310_s24] sm:$0x1] %vm2489_vm9, %v2591_v6 }
 0x322   : > { %v3165_v34 = vpop.trf.xlu0 }
 0x323   : > { %v3169_v20 = vunpack.i.h.bf16 %v3165_v34  ;;  %v3166_v12 = vunpack.i.l.bf16 %v3165_v34 }
 0x325   : > { %v2657_v37 = vpack.c.bf16 %v3169_v20, %v3166_v12 }
 0x327   : > { %2658 = vst [vmem:[%s298_s28] sm:$0xff] %v2657_v37 }
 0x328 PF: > { %s16_s20 = sadd.s32 1, %s3203_s20   ;;  %s4672_s18 = smov %s3199_s19 }
 0x329   : > { %p13_p5 = scmp.ge.s32.totalorder %s16_s20, 4   ;;  %s4673_s19 = smov %s4675_s21 }
 0x32b   :  { %15 = sbr.rel (!%p13_p5) target bundleno = 2 (0x2), region = 92 }

</bundles_post_ra>
